<compile_context>
chip_gen: v5e
topology: v5e:2x2
jax: 0.10.0
libtpu: 0.0.40
codegen_flags: <defaults>
</compile_context>

<pallas_src>
import functools

import jax
import jax.numpy as jnp
from jax import lax
from jax.experimental import pallas as pl
from jax.experimental.pallas import tpu as pltpu


# ----------------------------------------------------------------------------
# Fused MSDilateBlock kernel
# ----------------------------------------------------------------------------
def _msdilate_kernel(x_ref, wb_ref, w0_ref, w1_ref, bb_ref, b0_ref, b1_ref,
                     o_ref, xflat, catflat, hflat, colb, col0, col1,
                     *, H, W, C, dils, left):
    """Layouts (all channel-major, HW in lanes):
        x_ref   : (1, C, HW)         input image (NCHW reshaped)
        wb_ref  : (2C, 4*9*C)        branch weights, block-diag over branches
        w0_ref  : (C, 9*2C)          convi[0] weights
        w1_ref  : (C, 9*C)           convi[1] weights
        b*_ref  : (Cout, 1)          biases
        o_ref   : (1, C, HW)         output
        xflat   : (C,  L) VMEM       zero-framed flat input   (L = 2*left+HW)
        catflat : (2C, L) VMEM       zero-framed flat 'cat'
        hflat   : (C,  L) VMEM       zero-framed flat 'h'
        colb    : (4*9*C, HW) VMEM   im2col for the 4 dilated branches
        col0    : (9*2C, HW) VMEM    im2col for convi[0]
        col1    : (9*C,  HW) VMEM    im2col for convi[1]
    """
    HW = H * W
    C2 = wb_ref.shape[0]                         # = 2*C
    f32 = jnp.float32

    # column index of every output lane (hoisted once; used for W-edge masks)
    col = lax.broadcasted_iota(jnp.int32, (1, HW), 1) % W

    def lrelu(v):
        return jnp.where(v > 0, v, 0.2 * v)

    def frame_store(dst, interior):
        """Write `interior` into the centre of a zero-framed flat buffer."""
        z = jnp.zeros((dst.shape[0], left), dst.dtype)
        dst[:, 0:left] = z                                  # left halo (aligned)
        dst[:, left + HW:left + HW + left] = z              # right halo (aligned)
        dst[:, left:left + HW] = interior.astype(dst.dtype)  # dense, lane-aligned

    def im2col(src, dst, row_base, cin, d):
        """Pack the nine dilated taps of `src` into rows of `dst`."""
        for ky in range(3):
            for kx in range(3):
                dy, dx = (ky - 1) * d, (kx - 1) * d
                s0 = left + dy * W + dx                     # contiguous lane window
                sl = src[:, s0:s0 + HW]                     # (cin, HW)
                if dx != 0:                                 # mask W wrap-around
                    ok = jnp.logical_and(col + dx >= 0, col + dx < W)
                    sl = jnp.where(ok, sl, jnp.zeros_like(sl))
                r0 = row_base + (ky * 3 + kx) * cin
                dst[r0:r0 + cin, :] = sl                    # aligned dense store

    # ---- stage 0: embed x into its zero-framed flat buffer ------------------
    frame_store(xflat, x_ref[0])

    # ---- stage 1: four dilated 3x3 branches -> cat (2C, HW), LeakyReLU ------
    for g, d in enumerate(dils):
        im2col(xflat, colb, g * 9 * C, C, d)
    cat = jnp.dot(wb_ref[...], colb[...], preferred_element_type=f32)
    cat = lrelu(cat + bb_ref[...].astype(f32))

    # ---- stage 2: convi[0] 3x3, 2C -> C, LeakyReLU ---------------------------
    frame_store(catflat, cat)
    im2col(catflat, col0, 0, C2, 1)
    h = jnp.dot(w0_ref[...], col0[...], preferred_element_type=f32)
    h = lrelu(h + b0_ref[...].astype(f32))

    # ---- stage 3: convi[1] 3x3, C -> C, + residual ---------------------------
    frame_store(hflat, h)
    im2col(hflat, col1, 0, C, 1)
    y = jnp.dot(w1_ref[...], col1[...], preferred_element_type=f32)
    y = y + b1_ref[...].astype(f32) + x_ref[0].astype(f32)
    o_ref[0] = y.astype(o_ref.dtype)


def msdilate_block(x_nchw, params, dilation=(7, 5, 3, 1)):
    """x_nchw: (N, C, H, W).  Returns (N, C, H, W)."""
    N, C, H, W = x_nchw.shape
    Ce = C // 2
    G = len(dilation)
    Catot = G * Ce                      # = 2*C for the module's 4 branches
    HW = H * W
    maxd = max(dilation)
    left = ((maxd * (W + 1) + 127) // 128) * 128   # zero frame, lane-aligned
    L = left + HW + left
    dt = x_nchw.dtype

    # ---- pack weights into lane-major "lhs" form (Cout, K) ------------------
    def tap_major(w):                   # (3,3,Ci,Co) -> (Co, 9*Ci)
        ci, co = w.shape[2], w.shape[3]
        return jnp.transpose(w.reshape(9, ci, co), (2, 0, 1)).reshape(co, 9 * ci)

    wb = jnp.zeros((Catot, G * 9 * C), dt)
    bb = jnp.zeros((Catot,), dt)
    for g in range(G):                  # block-diagonal over the 4 branches
        wb = wb.at[g * Ce:(g + 1) * Ce, g * 9 * C:(g + 1) * 9 * C].set(
            tap_major(params[f"w{g + 1}"]).astype(dt))
        bb = bb.at[g * Ce:(g + 1) * Ce].set(params[f"b{g + 1}"].astype(dt))
    w0 = tap_major(params["wi0"]).astype(dt)            # (C, 9*2C)
    w1 = tap_major(params["wi1"]).astype(dt)            # (C, 9*C)
    bb = bb.reshape(Catot, 1)
    b0 = params["bi0"].reshape(C, 1).astype(dt)
    b1 = params["bi1"].reshape(C, 1).astype(dt)

    x_k = x_nchw.reshape(N, C, HW)

    kernel = functools.partial(_msdilate_kernel, H=H, W=W, C=C,
                               dils=tuple(dilation), left=left)

    out = pl.pallas_call(
        kernel,
        out_shape=jax.ShapeDtypeStruct((N, C, HW), dt),
        grid=(N,),
        in_specs=[
            pl.BlockSpec((1, C, HW), lambda n: (n, 0, 0)),        # x
            pl.BlockSpec((Catot, G * 9 * C), lambda n: (0, 0)),   # branch weights
            pl.BlockSpec((C, 9 * Catot), lambda n: (0, 0)),       # convi[0] weights
            pl.BlockSpec((C, 9 * C), lambda n: (0, 0)),           # convi[1] weights
            pl.BlockSpec((Catot, 1), lambda n: (0, 0)),           # branch biases
            pl.BlockSpec((C, 1), lambda n: (0, 0)),               # bi0
            pl.BlockSpec((C, 1), lambda n: (0, 0)),               # bi1
        ],
        out_specs=pl.BlockSpec((1, C, HW), lambda n: (n, 0, 0)),
        scratch_shapes=[
            pltpu.VMEM((C, L), dt),                # xflat
            pltpu.VMEM((Catot, L), dt),            # catflat
            pltpu.VMEM((C, L), dt),                # hflat
            pltpu.VMEM((G * 9 * C, HW), dt),       # colb
            pltpu.VMEM((9 * Catot, HW), dt),       # col0
            pltpu.VMEM((9 * C, HW), dt),           # col1
        ],
        compiler_params=pltpu.CompilerParams(
            dimension_semantics=("parallel",),
            vmem_limit_bytes=32 * 1024 * 1024),
    )(x_k, wb, w0, w1, bb, b0, b1)
    return out.reshape(N, C, H, W)


# ----------------------------------------------------------------------------
# Parameter setup (deterministic, synthetic; SpectralNorm emulated at init)
# ----------------------------------------------------------------------------
def _spectral_normalize(w, n_iter=10):
    """Divide weight by its largest singular value (SpectralNorm semantics)."""
    Cout = w.shape[-1]
    m = jnp.transpose(w, (3, 0, 1, 2)).reshape(Cout, -1)
    u = jnp.ones((Cout,), w.dtype) / jnp.sqrt(jnp.asarray(Cout, w.dtype))
    for _ in range(n_iter):
        v = m.T @ u
        v = v / (jnp.linalg.norm(v) + 1e-12)
        u = m @ v
        u = u / (jnp.linalg.norm(u) + 1e-12)
    sigma = u @ (m @ v)
    return w / sigma


def init_msdilate_params(key, in_channels, dtype=jnp.float32):
    C = in_channels
    half = C // 2
    shapes = {
        "w1": (3, 3, C, half), "w2": (3, 3, C, half),
        "w3": (3, 3, C, half), "w4": (3, 3, C, half),
        "wi0": (3, 3, 2 * C, C), "wi1": (3, 3, C, C),
    }
    params = {}
    keys = jax.random.split(key, 2 * len(shapes))
    for i, (name, shp) in enumerate(shapes.items()):
        fan_in = shp[0] * shp[1] * shp[2]
        w = jax.random.normal(keys[2 * i], shp, dtype) * (1.0 / jnp.sqrt(fan_in))
        params[name] = _spectral_normalize(w)
        bname = "b" + name[1:]
        params[bname] = 0.01 * jax.random.normal(keys[2 * i + 1], (shp[-1],), dtype)
    return params


# ----------------------------------------------------------------------------
# Plain-JAX reference (correctness check, NHWC)
# ----------------------------------------------------------------------------
def _conv_ref(x, w, b, dilation):
    y = lax.conv_general_dilated(
        x, w, window_strides=(1, 1),
        padding=[(dilation, dilation), (dilation, dilation)],
        rhs_dilation=(dilation, dilation),
        dimension_numbers=("NHWC", "HWIO", "NHWC"),
    )
    return y + b[None, None, None, :]


def msdilate_block_ref(x, p, dilation=(7, 5, 3, 1)):
    lrelu = lambda t: jnp.where(t > 0, t, 0.2 * t)
    c1 = lrelu(_conv_ref(x, p["w1"], p["b1"], dilation[0]))
    c2 = lrelu(_conv_ref(x, p["w2"], p["b2"], dilation[1]))
    c3 = lrelu(_conv_ref(x, p["w3"], p["b3"], dilation[2]))
    c4 = lrelu(_conv_ref(x, p["w4"], p["b4"], dilation[3]))
    cat = jnp.concatenate([c1, c2, c3, c4], axis=-1)
    h = lrelu(_conv_ref(cat, p["wi0"], p["bi0"], 1))
    return _conv_ref(h, p["wi1"], p["bi1"], 1) + x


# ----------------------------------------------------------------------------
if __name__ == "__main__":
    key = jax.random.PRNGKey(0)
    k_x, k_p = jax.random.split(key)

    N, C, H, W = 2, 8, 16, 16                      # NCHW module config
    x_nchw = jax.random.normal(k_x, (N, C, H, W), jnp.float32)
    params = init_msdilate_params(k_p, C)

    fwd = jax.jit(msdilate_block)
    out = jax.block_until_ready(fwd(x_nchw, params))           # (N, C, H, W)

    x_nhwc = jnp.transpose(x_nchw, (0, 2, 3, 1))
    ref = jnp.transpose(msdilate_block_ref(x_nhwc, params), (0, 3, 1, 2))
    ref = jax.block_until_ready(ref)

    assert out.shape == (N, C, H, W)
    err = float(jnp.max(jnp.abs(out - ref)))
    assert jnp.allclose(out, ref, atol=1e-3, rtol=1e-3), err

    print("KERNEL_OK")
</pallas_src>

<mosaic_0001>
module attributes {stable_mosaic.version = 11 : i64} {
  func.func @_msdilate_kernel(%arg0: i32, %arg1: memref<1x8x256xf32, #tpu.memory_space<vmem>>, %arg2: memref<16x288xf32, #tpu.memory_space<vmem>>, %arg3: memref<8x144xf32, #tpu.memory_space<vmem>>, %arg4: memref<8x72xf32, #tpu.memory_space<vmem>>, %arg5: memref<16x1xf32, #tpu.memory_space<vmem>>, %arg6: memref<8x1xf32, #tpu.memory_space<vmem>>, %arg7: memref<8x1xf32, #tpu.memory_space<vmem>>, %arg8: memref<1x8x256xf32, #tpu.memory_space<vmem>>, %arg9: memref<8x512xf32, #tpu.memory_space<vmem>>, %arg10: memref<16x512xf32, #tpu.memory_space<vmem>>, %arg11: memref<8x512xf32, #tpu.memory_space<vmem>>, %arg12: memref<288x256xf32, #tpu.memory_space<vmem>>, %arg13: memref<144x256xf32, #tpu.memory_space<vmem>>, %arg14: memref<72x256xf32, #tpu.memory_space<vmem>>) attributes {dimension_semantics = [#tpu.dimension_semantics<parallel>], iteration_bounds = array<i64: 2>, scalar_prefetch = 0 : i64, scratch_operands = 6 : i64, tpu.core_type = #tpu.core_type<tc>, window_params = [{transform_indices = @transform_0, window_bounds = array<i64: 1, 8, 256>}, {pipeline_mode = #tpu.pipeline_mode<synchronous>, transform_indices = @transform_1, window_bounds = array<i64: 16, 288>}, {pipeline_mode = #tpu.pipeline_mode<synchronous>, transform_indices = @transform_2, window_bounds = array<i64: 8, 144>}, {pipeline_mode = #tpu.pipeline_mode<synchronous>, transform_indices = @transform_3, window_bounds = array<i64: 8, 72>}, {pipeline_mode = #tpu.pipeline_mode<synchronous>, transform_indices = @transform_4, window_bounds = array<i64: 16, 1>}, {pipeline_mode = #tpu.pipeline_mode<synchronous>, transform_indices = @transform_5, window_bounds = array<i64: 8, 1>}, {pipeline_mode = #tpu.pipeline_mode<synchronous>, transform_indices = @transform_6, window_bounds = array<i64: 8, 1>}, {transform_indices = @transform_7, window_bounds = array<i64: 1, 8, 256>}]} {
    %0 = tpu.iota {dimensions = array<i32: 1>} : vector<1x256xi32>
    %c16_i32 = arith.constant 16 : i32
    %c0_i32 = arith.constant 0 : i32
    %1 = arith.cmpi eq, %c16_i32, %c0_i32 : i32
    %c1_i32 = arith.constant 1 : i32
    %2 = arith.select %1, %c1_i32, %c16_i32 : i32
    %3 = vector.broadcast %2 : i32 to vector<1x256xi32>
    %4 = arith.remsi %0, %3 : vector<1x256xi32>
    %c0_i32_0 = arith.constant 0 : i32
    %5 = vector.broadcast %c0_i32_0 : i32 to vector<1x256xi32>
    %6 = arith.cmpi ne, %4, %5 : vector<1x256xi32>
    %c0_i32_1 = arith.constant 0 : i32
    %7 = vector.broadcast %c0_i32_1 : i32 to vector<1x256xi32>
    %8 = arith.cmpi slt, %4, %7 : vector<1x256xi32>
    %c0_i32_2 = arith.constant 0 : i32
    %9 = arith.cmpi slt, %2, %c0_i32_2 : i32
    %10 = vector.broadcast %9 : i1 to vector<1x256xi1>
    %11 = vector.broadcast %10 : vector<1x256xi1> to vector<1x256xi1>
    %12 = arith.xori %8, %11 : vector<1x256xi1>
    %13 = arith.andi %12, %6 : vector<1x256xi1>
    %14 = vector.broadcast %2 : i32 to vector<1x256xi32>
    %15 = arith.addi %4, %14 : vector<1x256xi32>
    %16 = arith.select %13, %15, %4 : vector<1x256xi1>, vector<1x256xi32>
    %c0 = arith.constant 0 : index
    %c0_3 = arith.constant 0 : index
    %c0_4 = arith.constant 0 : index
    %17 = vector.load %arg1[%c0, %c0_3, %c0_4] : memref<1x8x256xf32, #tpu.memory_space<vmem>>, vector<1x8x256xf32>
    %18 = vector.shape_cast %17 : vector<1x8x256xf32> to vector<8x256xf32>
    %cst = arith.constant 0.000000e+00 : f32
    %19 = vector.broadcast %cst : f32 to vector<8x128xf32>
    %c0_5 = arith.constant 0 : index
    %c0_6 = arith.constant 0 : index
    %20 = vector.load %arg9[%c0_5, %c0_6] : memref<8x512xf32, #tpu.memory_space<vmem>>, vector<8x128xf32>
    tpu.vector_store %arg9[%c0_5, %c0_6], %19 {strides = array<i32>} : memref<8x512xf32, #tpu.memory_space<vmem>>, vector<8x128xf32>,
    %c0_7 = arith.constant 0 : index
    %c384 = arith.constant 384 : index
    %21 = vector.load %arg9[%c0_7, %c384] : memref<8x512xf32, #tpu.memory_space<vmem>>, vector<8x128xf32>
    tpu.vector_store %arg9[%c0_7, %c384], %19 {strides = array<i32>} : memref<8x512xf32, #tpu.memory_space<vmem>>, vector<8x128xf32>,
    %c0_8 = arith.constant 0 : index
    %c128 = arith.constant 128 : index
    %22 = vector.load %arg9[%c0_8, %c128] : memref<8x512xf32, #tpu.memory_space<vmem>>, vector<8x256xf32>
    tpu.vector_store %arg9[%c0_8, %c128], %18 {strides = array<i32>} : memref<8x512xf32, #tpu.memory_space<vmem>>, vector<8x256xf32>,
    %c0_9 = arith.constant 0 : index
    %c9 = arith.constant 9 : index
    %23 = vector.load %arg9[%c0_9, %c9] : memref<8x512xf32, #tpu.memory_space<vmem>>, vector<8x256xf32>
    %c-7_i32 = arith.constant -7 : i32
    %24 = vector.broadcast %c-7_i32 : i32 to vector<1x256xi32>
    %25 = arith.addi %16, %24 : vector<1x256xi32>
    %c0_i32_10 = arith.constant 0 : i32
    %26 = vector.broadcast %c0_i32_10 : i32 to vector<1x256xi32>
    %27 = arith.cmpi sge, %25, %26 : vector<1x256xi32>
    %c-7_i32_11 = arith.constant -7 : i32
    %28 = vector.broadcast %c-7_i32_11 : i32 to vector<1x256xi32>
    %29 = arith.addi %16, %28 : vector<1x256xi32>
    %c16_i32_12 = arith.constant 16 : i32
    %30 = vector.broadcast %c16_i32_12 : i32 to vector<1x256xi32>
    %31 = arith.cmpi slt, %29, %30 : vector<1x256xi32>
    %32 = arith.andi %27, %31 : vector<1x256xi1>
    %cst_13 = arith.constant 0.000000e+00 : f32
    %33 = vector.broadcast %cst_13 : f32 to vector<8x256xf32>
    %34 = vector.shape_cast %32 : vector<1x256xi1> to vector<1x256xi1>
    %35 = vector.broadcast %34 : vector<1x256xi1> to vector<8x256xi1>
    %36 = arith.select %35, %23, %33 : vector<8x256xi1>, vector<8x256xf32>
    %c0_14 = arith.constant 0 : index
    %c0_15 = arith.constant 0 : index
    %37 = vector.load %arg12[%c0_14, %c0_15] : memref<288x256xf32, #tpu.memory_space<vmem>>, vector<8x256xf32>
    tpu.vector_store %arg12[%c0_14, %c0_15], %36 {strides = array<i32>} : memref<288x256xf32, #tpu.memory_space<vmem>>, vector<8x256xf32>,
    %c0_16 = arith.constant 0 : index
    %c16 = arith.constant 16 : index
    %38 = vector.load %arg9[%c0_16, %c16] : memref<8x512xf32, #tpu.memory_space<vmem>>, vector<8x256xf32>
    %c8 = arith.constant 8 : index
    %c0_17 = arith.constant 0 : index
    %39 = vector.load %arg12[%c8, %c0_17] : memref<288x256xf32, #tpu.memory_space<vmem>>, vector<8x256xf32>
    tpu.vector_store %arg12[%c8, %c0_17], %38 {strides = array<i32>} : memref<288x256xf32, #tpu.memory_space<vmem>>, vector<8x256xf32>,
    %c0_18 = arith.constant 0 : index
    %c23 = arith.constant 23 : index
    %40 = vector.load %arg9[%c0_18, %c23] : memref<8x512xf32, #tpu.memory_space<vmem>>, vector<8x256xf32>
    %c7_i32 = arith.constant 7 : i32
    %41 = vector.broadcast %c7_i32 : i32 to vector<1x256xi32>
    %42 = arith.addi %16, %41 : vector<1x256xi32>
    %c0_i32_19 = arith.constant 0 : i32
    %43 = vector.broadcast %c0_i32_19 : i32 to vector<1x256xi32>
    %44 = arith.cmpi sge, %42, %43 : vector<1x256xi32>
    %c7_i32_20 = arith.constant 7 : i32
    %45 = vector.broadcast %c7_i32_20 : i32 to vector<1x256xi32>
    %46 = arith.addi %16, %45 : vector<1x256xi32>
    %c16_i32_21 = arith.constant 16 : i32
    %47 = vector.broadcast %c16_i32_21 : i32 to vector<1x256xi32>
    %48 = arith.cmpi slt, %46, %47 : vector<1x256xi32>
    %49 = arith.andi %44, %48 : vector<1x256xi1>
    %cst_22 = arith.constant 0.000000e+00 : f32
    %50 = vector.broadcast %cst_22 : f32 to vector<8x256xf32>
    %51 = vector.shape_cast %49 : vector<1x256xi1> to vector<1x256xi1>
    %52 = vector.broadcast %51 : vector<1x256xi1> to vector<8x256xi1>
    %53 = arith.select %52, %40, %50 : vector<8x256xi1>, vector<8x256xf32>
    %c16_23 = arith.constant 16 : index
    %c0_24 = arith.constant 0 : index
    %54 = vector.load %arg12[%c16_23, %c0_24] : memref<288x256xf32, #tpu.memory_space<vmem>>, vector<8x256xf32>
    tpu.vector_store %arg12[%c16_23, %c0_24], %53 {strides = array<i32>} : memref<288x256xf32, #tpu.memory_space<vmem>>, vector<8x256xf32>,
    %c0_25 = arith.constant 0 : index
    %c121 = arith.constant 121 : index
    %55 = vector.load %arg9[%c0_25, %c121] : memref<8x512xf32, #tpu.memory_space<vmem>>, vector<8x256xf32>
    %c-7_i32_26 = arith.constant -7 : i32
    %56 = vector.broadcast %c-7_i32_26 : i32 to vector<1x256xi32>
    %57 = arith.addi %16, %56 : vector<1x256xi32>
    %c0_i32_27 = arith.constant 0 : i32
    %58 = vector.broadcast %c0_i32_27 : i32 to vector<1x256xi32>
    %59 = arith.cmpi sge, %57, %58 : vector<1x256xi32>
    %c-7_i32_28 = arith.constant -7 : i32
    %60 = vector.broadcast %c-7_i32_28 : i32 to vector<1x256xi32>
    %61 = arith.addi %16, %60 : vector<1x256xi32>
    %c16_i32_29 = arith.constant 16 : i32
    %62 = vector.broadcast %c16_i32_29 : i32 to vector<1x256xi32>
    %63 = arith.cmpi slt, %61, %62 : vector<1x256xi32>
    %64 = arith.andi %59, %63 : vector<1x256xi1>
    %cst_30 = arith.constant 0.000000e+00 : f32
    %65 = vector.broadcast %cst_30 : f32 to vector<8x256xf32>
    %66 = vector.shape_cast %64 : vector<1x256xi1> to vector<1x256xi1>
    %67 = vector.broadcast %66 : vector<1x256xi1> to vector<8x256xi1>
    %68 = arith.select %67, %55, %65 : vector<8x256xi1>, vector<8x256xf32>
    %c24 = arith.constant 24 : index
    %c0_31 = arith.constant 0 : index
    %69 = vector.load %arg12[%c24, %c0_31] : memref<288x256xf32, #tpu.memory_space<vmem>>, vector<8x256xf32>
    tpu.vector_store %arg12[%c24, %c0_31], %68 {strides = array<i32>} : memref<288x256xf32, #tpu.memory_space<vmem>>, vector<8x256xf32>,
    %c0_32 = arith.constant 0 : index
    %c128_33 = arith.constant 128 : index
    %70 = vector.load %arg9[%c0_32, %c128_33] : memref<8x512xf32, #tpu.memory_space<vmem>>, vector<8x256xf32>
    %c32 = arith.constant 32 : index
    %c0_34 = arith.constant 0 : index
    %71 = vector.load %arg12[%c32, %c0_34] : memref<288x256xf32, #tpu.memory_space<vmem>>, vector<8x256xf32>
    tpu.vector_store %arg12[%c32, %c0_34], %70 {strides = array<i32>} : memref<288x256xf32, #tpu.memory_space<vmem>>, vector<8x256xf32>,
    %c0_35 = arith.constant 0 : index
    %c135 = arith.constant 135 : index
    %72 = vector.load %arg9[%c0_35, %c135] : memref<8x512xf32, #tpu.memory_space<vmem>>, vector<8x256xf32>
    %c7_i32_36 = arith.constant 7 : i32
    %73 = vector.broadcast %c7_i32_36 : i32 to vector<1x256xi32>
    %74 = arith.addi %16, %73 : vector<1x256xi32>
    %c0_i32_37 = arith.constant 0 : i32
    %75 = vector.broadcast %c0_i32_37 : i32 to vector<1x256xi32>
    %76 = arith.cmpi sge, %74, %75 : vector<1x256xi32>
    %c7_i32_38 = arith.constant 7 : i32
    %77 = vector.broadcast %c7_i32_38 : i32 to vector<1x256xi32>
    %78 = arith.addi %16, %77 : vector<1x256xi32>
    %c16_i32_39 = arith.constant 16 : i32
    %79 = vector.broadcast %c16_i32_39 : i32 to vector<1x256xi32>
    %80 = arith.cmpi slt, %78, %79 : vector<1x256xi32>
    %81 = arith.andi %76, %80 : vector<1x256xi1>
    %cst_40 = arith.constant 0.000000e+00 : f32
    %82 = vector.broadcast %cst_40 : f32 to vector<8x256xf32>
    %83 = vector.shape_cast %81 : vector<1x256xi1> to vector<1x256xi1>
    %84 = vector.broadcast %83 : vector<1x256xi1> to vector<8x256xi1>
    %85 = arith.select %84, %72, %82 : vector<8x256xi1>, vector<8x256xf32>
    %c40 = arith.constant 40 : index
    %c0_41 = arith.constant 0 : index
    %86 = vector.load %arg12[%c40, %c0_41] : memref<288x256xf32, #tpu.memory_space<vmem>>, vector<8x256xf32>
    tpu.vector_store %arg12[%c40, %c0_41], %85 {strides = array<i32>} : memref<288x256xf32, #tpu.memory_space<vmem>>, vector<8x256xf32>,
    %c0_42 = arith.constant 0 : index
    %c233 = arith.constant 233 : index
    %87 = vector.load %arg9[%c0_42, %c233] : memref<8x512xf32, #tpu.memory_space<vmem>>, vector<8x256xf32>
    %c-7_i32_43 = arith.constant -7 : i32
    %88 = vector.broadcast %c-7_i32_43 : i32 to vector<1x256xi32>
    %89 = arith.addi %16, %88 : vector<1x256xi32>
    %c0_i32_44 = arith.constant 0 : i32
    %90 = vector.broadcast %c0_i32_44 : i32 to vector<1x256xi32>
    %91 = arith.cmpi sge, %89, %90 : vector<1x256xi32>
    %c-7_i32_45 = arith.constant -7 : i32
    %92 = vector.broadcast %c-7_i32_45 : i32 to vector<1x256xi32>
    %93 = arith.addi %16, %92 : vector<1x256xi32>
    %c16_i32_46 = arith.constant 16 : i32
    %94 = vector.broadcast %c16_i32_46 : i32 to vector<1x256xi32>
    %95 = arith.cmpi slt, %93, %94 : vector<1x256xi32>
    %96 = arith.andi %91, %95 : vector<1x256xi1>
    %cst_47 = arith.constant 0.000000e+00 : f32
    %97 = vector.broadcast %cst_47 : f32 to vector<8x256xf32>
    %98 = vector.shape_cast %96 : vector<1x256xi1> to vector<1x256xi1>
    %99 = vector.broadcast %98 : vector<1x256xi1> to vector<8x256xi1>
    %100 = arith.select %99, %87, %97 : vector<8x256xi1>, vector<8x256xf32>
    %c48 = arith.constant 48 : index
    %c0_48 = arith.constant 0 : index
    %101 = vector.load %arg12[%c48, %c0_48] : memref<288x256xf32, #tpu.memory_space<vmem>>, vector<8x256xf32>
    tpu.vector_store %arg12[%c48, %c0_48], %100 {strides = array<i32>} : memref<288x256xf32, #tpu.memory_space<vmem>>, vector<8x256xf32>,
    %c0_49 = arith.constant 0 : index
    %c240 = arith.constant 240 : index
    %102 = vector.load %arg9[%c0_49, %c240] : memref<8x512xf32, #tpu.memory_space<vmem>>, vector<8x256xf32>
    %c56 = arith.constant 56 : index
    %c0_50 = arith.constant 0 : index
    %103 = vector.load %arg12[%c56, %c0_50] : memref<288x256xf32, #tpu.memory_space<vmem>>, vector<8x256xf32>
    tpu.vector_store %arg12[%c56, %c0_50], %102 {strides = array<i32>} : memref<288x256xf32, #tpu.memory_space<vmem>>, vector<8x256xf32>,
    %c0_51 = arith.constant 0 : index
    %c247 = arith.constant 247 : index
    %104 = vector.load %arg9[%c0_51, %c247] : memref<8x512xf32, #tpu.memory_space<vmem>>, vector<8x256xf32>
    %c7_i32_52 = arith.constant 7 : i32
    %105 = vector.broadcast %c7_i32_52 : i32 to vector<1x256xi32>
    %106 = arith.addi %16, %105 : vector<1x256xi32>
    %c0_i32_53 = arith.constant 0 : i32
    %107 = vector.broadcast %c0_i32_53 : i32 to vector<1x256xi32>
    %108 = arith.cmpi sge, %106, %107 : vector<1x256xi32>
    %c7_i32_54 = arith.constant 7 : i32
    %109 = vector.broadcast %c7_i32_54 : i32 to vector<1x256xi32>
    %110 = arith.addi %16, %109 : vector<1x256xi32>
    %c16_i32_55 = arith.constant 16 : i32
    %111 = vector.broadcast %c16_i32_55 : i32 to vector<1x256xi32>
    %112 = arith.cmpi slt, %110, %111 : vector<1x256xi32>
    %113 = arith.andi %108, %112 : vector<1x256xi1>
    %cst_56 = arith.constant 0.000000e+00 : f32
    %114 = vector.broadcast %cst_56 : f32 to vector<8x256xf32>
    %115 = vector.shape_cast %113 : vector<1x256xi1> to vector<1x256xi1>
    %116 = vector.broadcast %115 : vector<1x256xi1> to vector<8x256xi1>
    %117 = arith.select %116, %104, %114 : vector<8x256xi1>, vector<8x256xf32>
    %c64 = arith.constant 64 : index
    %c0_57 = arith.constant 0 : index
    %118 = vector.load %arg12[%c64, %c0_57] : memref<288x256xf32, #tpu.memory_space<vmem>>, vector<8x256xf32>
    tpu.vector_store %arg12[%c64, %c0_57], %117 {strides = array<i32>} : memref<288x256xf32, #tpu.memory_space<vmem>>, vector<8x256xf32>,
    %c0_58 = arith.constant 0 : index
    %c43 = arith.constant 43 : index
    %119 = vector.load %arg9[%c0_58, %c43] : memref<8x512xf32, #tpu.memory_space<vmem>>, vector<8x256xf32>
    %c-5_i32 = arith.constant -5 : i32
    %120 = vector.broadcast %c-5_i32 : i32 to vector<1x256xi32>
    %121 = arith.addi %16, %120 : vector<1x256xi32>
    %c0_i32_59 = arith.constant 0 : i32
    %122 = vector.broadcast %c0_i32_59 : i32 to vector<1x256xi32>
    %123 = arith.cmpi sge, %121, %122 : vector<1x256xi32>
    %c-5_i32_60 = arith.constant -5 : i32
    %124 = vector.broadcast %c-5_i32_60 : i32 to vector<1x256xi32>
    %125 = arith.addi %16, %124 : vector<1x256xi32>
    %c16_i32_61 = arith.constant 16 : i32
    %126 = vector.broadcast %c16_i32_61 : i32 to vector<1x256xi32>
    %127 = arith.cmpi slt, %125, %126 : vector<1x256xi32>
    %128 = arith.andi %123, %127 : vector<1x256xi1>
    %cst_62 = arith.constant 0.000000e+00 : f32
    %129 = vector.broadcast %cst_62 : f32 to vector<8x256xf32>
    %130 = vector.shape_cast %128 : vector<1x256xi1> to vector<1x256xi1>
    %131 = vector.broadcast %130 : vector<1x256xi1> to vector<8x256xi1>
    %132 = arith.select %131, %119, %129 : vector<8x256xi1>, vector<8x256xf32>
    %c72 = arith.constant 72 : index
    %c0_63 = arith.constant 0 : index
    %133 = vector.load %arg12[%c72, %c0_63] : memref<288x256xf32, #tpu.memory_space<vmem>>, vector<8x256xf32>
    tpu.vector_store %arg12[%c72, %c0_63], %132 {strides = array<i32>} : memref<288x256xf32, #tpu.memory_space<vmem>>, vector<8x256xf32>,
    %c0_64 = arith.constant 0 : index
    %c48_65 = arith.constant 48 : index
    %134 = vector.load %arg9[%c0_64, %c48_65] : memref<8x512xf32, #tpu.memory_space<vmem>>, vector<8x256xf32>
    %c80 = arith.constant 80 : index
    %c0_66 = arith.constant 0 : index
    %135 = vector.load %arg12[%c80, %c0_66] : memref<288x256xf32, #tpu.memory_space<vmem>>, vector<8x256xf32>
    tpu.vector_store %arg12[%c80, %c0_66], %134 {strides = array<i32>} : memref<288x256xf32, #tpu.memory_space<vmem>>, vector<8x256xf32>,
    %c0_67 = arith.constant 0 : index
    %c53 = arith.constant 53 : index
    %136 = vector.load %arg9[%c0_67, %c53] : memref<8x512xf32, #tpu.memory_space<vmem>>, vector<8x256xf32>
    %c5_i32 = arith.constant 5 : i32
    %137 = vector.broadcast %c5_i32 : i32 to vector<1x256xi32>
    %138 = arith.addi %16, %137 : vector<1x256xi32>
    %c0_i32_68 = arith.constant 0 : i32
    %139 = vector.broadcast %c0_i32_68 : i32 to vector<1x256xi32>
    %140 = arith.cmpi sge, %138, %139 : vector<1x256xi32>
    %c5_i32_69 = arith.constant 5 : i32
    %141 = vector.broadcast %c5_i32_69 : i32 to vector<1x256xi32>
    %142 = arith.addi %16, %141 : vector<1x256xi32>
    %c16_i32_70 = arith.constant 16 : i32
    %143 = vector.broadcast %c16_i32_70 : i32 to vector<1x256xi32>
    %144 = arith.cmpi slt, %142, %143 : vector<1x256xi32>
    %145 = arith.andi %140, %144 : vector<1x256xi1>
    %cst_71 = arith.constant 0.000000e+00 : f32
    %146 = vector.broadcast %cst_71 : f32 to vector<8x256xf32>
    %147 = vector.shape_cast %145 : vector<1x256xi1> to vector<1x256xi1>
    %148 = vector.broadcast %147 : vector<1x256xi1> to vector<8x256xi1>
    %149 = arith.select %148, %136, %146 : vector<8x256xi1>, vector<8x256xf32>
    %c88 = arith.constant 88 : index
    %c0_72 = arith.constant 0 : index
    %150 = vector.load %arg12[%c88, %c0_72] : memref<288x256xf32, #tpu.memory_space<vmem>>, vector<8x256xf32>
    tpu.vector_store %arg12[%c88, %c0_72], %149 {strides = array<i32>} : memref<288x256xf32, #tpu.memory_space<vmem>>, vector<8x256xf32>,
    %c0_73 = arith.constant 0 : index
    %c123 = arith.constant 123 : index
    %151 = vector.load %arg9[%c0_73, %c123] : memref<8x512xf32, #tpu.memory_space<vmem>>, vector<8x256xf32>
    %c-5_i32_74 = arith.constant -5 : i32
    %152 = vector.broadcast %c-5_i32_74 : i32 to vector<1x256xi32>
    %153 = arith.addi %16, %152 : vector<1x256xi32>
    %c0_i32_75 = arith.constant 0 : i32
    %154 = vector.broadcast %c0_i32_75 : i32 to vector<1x256xi32>
    %155 = arith.cmpi sge, %153, %154 : vector<1x256xi32>
    %c-5_i32_76 = arith.constant -5 : i32
    %156 = vector.broadcast %c-5_i32_76 : i32 to vector<1x256xi32>
    %157 = arith.addi %16, %156 : vector<1x256xi32>
    %c16_i32_77 = arith.constant 16 : i32
    %158 = vector.broadcast %c16_i32_77 : i32 to vector<1x256xi32>
    %159 = arith.cmpi slt, %157, %158 : vector<1x256xi32>
    %160 = arith.andi %155, %159 : vector<1x256xi1>
    %cst_78 = arith.constant 0.000000e+00 : f32
    %161 = vector.broadcast %cst_78 : f32 to vector<8x256xf32>
    %162 = vector.shape_cast %160 : vector<1x256xi1> to vector<1x256xi1>
    %163 = vector.broadcast %162 : vector<1x256xi1> to vector<8x256xi1>
    %164 = arith.select %163, %151, %161 : vector<8x256xi1>, vector<8x256xf32>
    %c96 = arith.constant 96 : index
    %c0_79 = arith.constant 0 : index
    %165 = vector.load %arg12[%c96, %c0_79] : memref<288x256xf32, #tpu.memory_space<vmem>>, vector<8x256xf32>
    tpu.vector_store %arg12[%c96, %c0_79], %164 {strides = array<i32>} : memref<288x256xf32, #tpu.memory_space<vmem>>, vector<8x256xf32>,
    %c0_80 = arith.constant 0 : index
    %c128_81 = arith.constant 128 : index
    %166 = vector.load %arg9[%c0_80, %c128_81] : memref<8x512xf32, #tpu.memory_space<vmem>>, vector<8x256xf32>
    %c104 = arith.constant 104 : index
    %c0_82 = arith.constant 0 : index
    %167 = vector.load %arg12[%c104, %c0_82] : memref<288x256xf32, #tpu.memory_space<vmem>>, vector<8x256xf32>
    tpu.vector_store %arg12[%c104, %c0_82], %166 {strides = array<i32>} : memref<288x256xf32, #tpu.memory_space<vmem>>, vector<8x256xf32>,
    %c0_83 = arith.constant 0 : index
    %c133 = arith.constant 133 : index
    %168 = vector.load %arg9[%c0_83, %c133] : memref<8x512xf32, #tpu.memory_space<vmem>>, vector<8x256xf32>
    %c5_i32_84 = arith.constant 5 : i32
    %169 = vector.broadcast %c5_i32_84 : i32 to vector<1x256xi32>
    %170 = arith.addi %16, %169 : vector<1x256xi32>
    %c0_i32_85 = arith.constant 0 : i32
    %171 = vector.broadcast %c0_i32_85 : i32 to vector<1x256xi32>
    %172 = arith.cmpi sge, %170, %171 : vector<1x256xi32>
    %c5_i32_86 = arith.constant 5 : i32
    %173 = vector.broadcast %c5_i32_86 : i32 to vector<1x256xi32>
    %174 = arith.addi %16, %173 : vector<1x256xi32>
    %c16_i32_87 = arith.constant 16 : i32
    %175 = vector.broadcast %c16_i32_87 : i32 to vector<1x256xi32>
    %176 = arith.cmpi slt, %174, %175 : vector<1x256xi32>
    %177 = arith.andi %172, %176 : vector<1x256xi1>
    %cst_88 = arith.constant 0.000000e+00 : f32
    %178 = vector.broadcast %cst_88 : f32 to vector<8x256xf32>
    %179 = vector.shape_cast %177 : vector<1x256xi1> to vector<1x256xi1>
    %180 = vector.broadcast %179 : vector<1x256xi1> to vector<8x256xi1>
    %181 = arith.select %180, %168, %178 : vector<8x256xi1>, vector<8x256xf32>
    %c112 = arith.constant 112 : index
    %c0_89 = arith.constant 0 : index
    %182 = vector.load %arg12[%c112, %c0_89] : memref<288x256xf32, #tpu.memory_space<vmem>>, vector<8x256xf32>
    tpu.vector_store %arg12[%c112, %c0_89], %181 {strides = array<i32>} : memref<288x256xf32, #tpu.memory_space<vmem>>, vector<8x256xf32>,
    %c0_90 = arith.constant 0 : index
    %c203 = arith.constant 203 : index
    %183 = vector.load %arg9[%c0_90, %c203] : memref<8x512xf32, #tpu.memory_space<vmem>>, vector<8x256xf32>
    %c-5_i32_91 = arith.constant -5 : i32
    %184 = vector.broadcast %c-5_i32_91 : i32 to vector<1x256xi32>
    %185 = arith.addi %16, %184 : vector<1x256xi32>
    %c0_i32_92 = arith.constant 0 : i32
    %186 = vector.broadcast %c0_i32_92 : i32 to vector<1x256xi32>
    %187 = arith.cmpi sge, %185, %186 : vector<1x256xi32>
    %c-5_i32_93 = arith.constant -5 : i32
    %188 = vector.broadcast %c-5_i32_93 : i32 to vector<1x256xi32>
    %189 = arith.addi %16, %188 : vector<1x256xi32>
    %c16_i32_94 = arith.constant 16 : i32
    %190 = vector.broadcast %c16_i32_94 : i32 to vector<1x256xi32>
    %191 = arith.cmpi slt, %189, %190 : vector<1x256xi32>
    %192 = arith.andi %187, %191 : vector<1x256xi1>
    %cst_95 = arith.constant 0.000000e+00 : f32
    %193 = vector.broadcast %cst_95 : f32 to vector<8x256xf32>
    %194 = vector.shape_cast %192 : vector<1x256xi1> to vector<1x256xi1>
    %195 = vector.broadcast %194 : vector<1x256xi1> to vector<8x256xi1>
    %196 = arith.select %195, %183, %193 : vector<8x256xi1>, vector<8x256xf32>
    %c120 = arith.constant 120 : index
    %c0_96 = arith.constant 0 : index
    %197 = vector.load %arg12[%c120, %c0_96] : memref<288x256xf32, #tpu.memory_space<vmem>>, vector<8x256xf32>
    tpu.vector_store %arg12[%c120, %c0_96], %196 {strides = array<i32>} : memref<288x256xf32, #tpu.memory_space<vmem>>, vector<8x256xf32>,
    %c0_97 = arith.constant 0 : index
    %c208 = arith.constant 208 : index
    %198 = vector.load %arg9[%c0_97, %c208] : memref<8x512xf32, #tpu.memory_space<vmem>>, vector<8x256xf32>
    %c128_98 = arith.constant 128 : index
    %c0_99 = arith.constant 0 : index
    %199 = vector.load %arg12[%c128_98, %c0_99] : memref<288x256xf32, #tpu.memory_space<vmem>>, vector<8x256xf32>
    tpu.vector_store %arg12[%c128_98, %c0_99], %198 {strides = array<i32>} : memref<288x256xf32, #tpu.memory_space<vmem>>, vector<8x256xf32>,
    %c0_100 = arith.constant 0 : index
    %c213 = arith.constant 213 : index
    %200 = vector.load %arg9[%c0_100, %c213] : memref<8x512xf32, #tpu.memory_space<vmem>>, vector<8x256xf32>
    %c5_i32_101 = arith.constant 5 : i32
    %201 = vector.broadcast %c5_i32_101 : i32 to vector<1x256xi32>
    %202 = arith.addi %16, %201 : vector<1x256xi32>
    %c0_i32_102 = arith.constant 0 : i32
    %203 = vector.broadcast %c0_i32_102 : i32 to vector<1x256xi32>
    %204 = arith.cmpi sge, %202, %203 : vector<1x256xi32>
    %c5_i32_103 = arith.constant 5 : i32
    %205 = vector.broadcast %c5_i32_103 : i32 to vector<1x256xi32>
    %206 = arith.addi %16, %205 : vector<1x256xi32>
    %c16_i32_104 = arith.constant 16 : i32
    %207 = vector.broadcast %c16_i32_104 : i32 to vector<1x256xi32>
    %208 = arith.cmpi slt, %206, %207 : vector<1x256xi32>
    %209 = arith.andi %204, %208 : vector<1x256xi1>
    %cst_105 = arith.constant 0.000000e+00 : f32
    %210 = vector.broadcast %cst_105 : f32 to vector<8x256xf32>
    %211 = vector.shape_cast %209 : vector<1x256xi1> to vector<1x256xi1>
    %212 = vector.broadcast %211 : vector<1x256xi1> to vector<8x256xi1>
    %213 = arith.select %212, %200, %210 : vector<8x256xi1>, vector<8x256xf32>
    %c136 = arith.constant 136 : index
    %c0_106 = arith.constant 0 : index
    %214 = vector.load %arg12[%c136, %c0_106] : memref<288x256xf32, #tpu.memory_space<vmem>>, vector<8x256xf32>
    tpu.vector_store %arg12[%c136, %c0_106], %213 {strides = array<i32>} : memref<288x256xf32, #tpu.memory_space<vmem>>, vector<8x256xf32>,
    %c0_107 = arith.constant 0 : index
    %c77 = arith.constant 77 : index
    %215 = vector.load %arg9[%c0_107, %c77] : memref<8x512xf32, #tpu.memory_space<vmem>>, vector<8x256xf32>
    %c-3_i32 = arith.constant -3 : i32
    %216 = vector.broadcast %c-3_i32 : i32 to vector<1x256xi32>
    %217 = arith.addi %16, %216 : vector<1x256xi32>
    %c0_i32_108 = arith.constant 0 : i32
    %218 = vector.broadcast %c0_i32_108 : i32 to vector<1x256xi32>
    %219 = arith.cmpi sge, %217, %218 : vector<1x256xi32>
    %c-3_i32_109 = arith.constant -3 : i32
    %220 = vector.broadcast %c-3_i32_109 : i32 to vector<1x256xi32>
    %221 = arith.addi %16, %220 : vector<1x256xi32>
    %c16_i32_110 = arith.constant 16 : i32
    %222 = vector.broadcast %c16_i32_110 : i32 to vector<1x256xi32>
    %223 = arith.cmpi slt, %221, %222 : vector<1x256xi32>
    %224 = arith.andi %219, %223 : vector<1x256xi1>
    %cst_111 = arith.constant 0.000000e+00 : f32
    %225 = vector.broadcast %cst_111 : f32 to vector<8x256xf32>
    %226 = vector.shape_cast %224 : vector<1x256xi1> to vector<1x256xi1>
    %227 = vector.broadcast %226 : vector<1x256xi1> to vector<8x256xi1>
    %228 = arith.select %227, %215, %225 : vector<8x256xi1>, vector<8x256xf32>
    %c144 = arith.constant 144 : index
    %c0_112 = arith.constant 0 : index
    %229 = vector.load %arg12[%c144, %c0_112] : memref<288x256xf32, #tpu.memory_space<vmem>>, vector<8x256xf32>
    tpu.vector_store %arg12[%c144, %c0_112], %228 {strides = array<i32>} : memref<288x256xf32, #tpu.memory_space<vmem>>, vector<8x256xf32>,
    %c0_113 = arith.constant 0 : index
    %c80_114 = arith.constant 80 : index
    %230 = vector.load %arg9[%c0_113, %c80_114] : memref<8x512xf32, #tpu.memory_space<vmem>>, vector<8x256xf32>
    %c152 = arith.constant 152 : index
    %c0_115 = arith.constant 0 : index
    %231 = vector.load %arg12[%c152, %c0_115] : memref<288x256xf32, #tpu.memory_space<vmem>>, vector<8x256xf32>
    tpu.vector_store %arg12[%c152, %c0_115], %230 {strides = array<i32>} : memref<288x256xf32, #tpu.memory_space<vmem>>, vector<8x256xf32>,
    %c0_116 = arith.constant 0 : index
    %c83 = arith.constant 83 : index
    %232 = vector.load %arg9[%c0_116, %c83] : memref<8x512xf32, #tpu.memory_space<vmem>>, vector<8x256xf32>
    %c3_i32 = arith.constant 3 : i32
    %233 = vector.broadcast %c3_i32 : i32 to vector<1x256xi32>
    %234 = arith.addi %16, %233 : vector<1x256xi32>
    %c0_i32_117 = arith.constant 0 : i32
    %235 = vector.broadcast %c0_i32_117 : i32 to vector<1x256xi32>
    %236 = arith.cmpi sge, %234, %235 : vector<1x256xi32>
    %c3_i32_118 = arith.constant 3 : i32
    %237 = vector.broadcast %c3_i32_118 : i32 to vector<1x256xi32>
    %238 = arith.addi %16, %237 : vector<1x256xi32>
    %c16_i32_119 = arith.constant 16 : i32
    %239 = vector.broadcast %c16_i32_119 : i32 to vector<1x256xi32>
    %240 = arith.cmpi slt, %238, %239 : vector<1x256xi32>
    %241 = arith.andi %236, %240 : vector<1x256xi1>
    %cst_120 = arith.constant 0.000000e+00 : f32
    %242 = vector.broadcast %cst_120 : f32 to vector<8x256xf32>
    %243 = vector.shape_cast %241 : vector<1x256xi1> to vector<1x256xi1>
    %244 = vector.broadcast %243 : vector<1x256xi1> to vector<8x256xi1>
    %245 = arith.select %244, %232, %242 : vector<8x256xi1>, vector<8x256xf32>
    %c160 = arith.constant 160 : index
    %c0_121 = arith.constant 0 : index
    %246 = vector.load %arg12[%c160, %c0_121] : memref<288x256xf32, #tpu.memory_space<vmem>>, vector<8x256xf32>
    tpu.vector_store %arg12[%c160, %c0_121], %245 {strides = array<i32>} : memref<288x256xf32, #tpu.memory_space<vmem>>, vector<8x256xf32>,
    %c0_122 = arith.constant 0 : index
    %c125 = arith.constant 125 : index
    %247 = vector.load %arg9[%c0_122, %c125] : memref<8x512xf32, #tpu.memory_space<vmem>>, vector<8x256xf32>
    %c-3_i32_123 = arith.constant -3 : i32
    %248 = vector.broadcast %c-3_i32_123 : i32 to vector<1x256xi32>
    %249 = arith.addi %16, %248 : vector<1x256xi32>
    %c0_i32_124 = arith.constant 0 : i32
    %250 = vector.broadcast %c0_i32_124 : i32 to vector<1x256xi32>
    %251 = arith.cmpi sge, %249, %250 : vector<1x256xi32>
    %c-3_i32_125 = arith.constant -3 : i32
    %252 = vector.broadcast %c-3_i32_125 : i32 to vector<1x256xi32>
    %253 = arith.addi %16, %252 : vector<1x256xi32>
    %c16_i32_126 = arith.constant 16 : i32
    %254 = vector.broadcast %c16_i32_126 : i32 to vector<1x256xi32>
    %255 = arith.cmpi slt, %253, %254 : vector<1x256xi32>
    %256 = arith.andi %251, %255 : vector<1x256xi1>
    %cst_127 = arith.constant 0.000000e+00 : f32
    %257 = vector.broadcast %cst_127 : f32 to vector<8x256xf32>
    %258 = vector.shape_cast %256 : vector<1x256xi1> to vector<1x256xi1>
    %259 = vector.broadcast %258 : vector<1x256xi1> to vector<8x256xi1>
    %260 = arith.select %259, %247, %257 : vector<8x256xi1>, vector<8x256xf32>
    %c168 = arith.constant 168 : index
    %c0_128 = arith.constant 0 : index
    %261 = vector.load %arg12[%c168, %c0_128] : memref<288x256xf32, #tpu.memory_space<vmem>>, vector<8x256xf32>
    tpu.vector_store %arg12[%c168, %c0_128], %260 {strides = array<i32>} : memref<288x256xf32, #tpu.memory_space<vmem>>, vector<8x256xf32>,
    %c0_129 = arith.constant 0 : index
    %c128_130 = arith.constant 128 : index
    %262 = vector.load %arg9[%c0_129, %c128_130] : memref<8x512xf32, #tpu.memory_space<vmem>>, vector<8x256xf32>
    %c176 = arith.constant 176 : index
    %c0_131 = arith.constant 0 : index
    %263 = vector.load %arg12[%c176, %c0_131] : memref<288x256xf32, #tpu.memory_space<vmem>>, vector<8x256xf32>
    tpu.vector_store %arg12[%c176, %c0_131], %262 {strides = array<i32>} : memref<288x256xf32, #tpu.memory_space<vmem>>, vector<8x256xf32>,
    %c0_132 = arith.constant 0 : index
    %c131 = arith.constant 131 : index
    %264 = vector.load %arg9[%c0_132, %c131] : memref<8x512xf32, #tpu.memory_space<vmem>>, vector<8x256xf32>
    %c3_i32_133 = arith.constant 3 : i32
    %265 = vector.broadcast %c3_i32_133 : i32 to vector<1x256xi32>
    %266 = arith.addi %16, %265 : vector<1x256xi32>
    %c0_i32_134 = arith.constant 0 : i32
    %267 = vector.broadcast %c0_i32_134 : i32 to vector<1x256xi32>
    %268 = arith.cmpi sge, %266, %267 : vector<1x256xi32>
    %c3_i32_135 = arith.constant 3 : i32
    %269 = vector.broadcast %c3_i32_135 : i32 to vector<1x256xi32>
    %270 = arith.addi %16, %269 : vector<1x256xi32>
    %c16_i32_136 = arith.constant 16 : i32
    %271 = vector.broadcast %c16_i32_136 : i32 to vector<1x256xi32>
    %272 = arith.cmpi slt, %270, %271 : vector<1x256xi32>
    %273 = arith.andi %268, %272 : vector<1x256xi1>
    %cst_137 = arith.constant 0.000000e+00 : f32
    %274 = vector.broadcast %cst_137 : f32 to vector<8x256xf32>
    %275 = vector.shape_cast %273 : vector<1x256xi1> to vector<1x256xi1>
    %276 = vector.broadcast %275 : vector<1x256xi1> to vector<8x256xi1>
    %277 = arith.select %276, %264, %274 : vector<8x256xi1>, vector<8x256xf32>
    %c184 = arith.constant 184 : index
    %c0_138 = arith.constant 0 : index
    %278 = vector.load %arg12[%c184, %c0_138] : memref<288x256xf32, #tpu.memory_space<vmem>>, vector<8x256xf32>
    tpu.vector_store %arg12[%c184, %c0_138], %277 {strides = array<i32>} : memref<288x256xf32, #tpu.memory_space<vmem>>, vector<8x256xf32>,
    %c0_139 = arith.constant 0 : index
    %c173 = arith.constant 173 : index
    %279 = vector.load %arg9[%c0_139, %c173] : memref<8x512xf32, #tpu.memory_space<vmem>>, vector<8x256xf32>
    %c-3_i32_140 = arith.constant -3 : i32
    %280 = vector.broadcast %c-3_i32_140 : i32 to vector<1x256xi32>
    %281 = arith.addi %16, %280 : vector<1x256xi32>
    %c0_i32_141 = arith.constant 0 : i32
    %282 = vector.broadcast %c0_i32_141 : i32 to vector<1x256xi32>
    %283 = arith.cmpi sge, %281, %282 : vector<1x256xi32>
    %c-3_i32_142 = arith.constant -3 : i32
    %284 = vector.broadcast %c-3_i32_142 : i32 to vector<1x256xi32>
    %285 = arith.addi %16, %284 : vector<1x256xi32>
    %c16_i32_143 = arith.constant 16 : i32
    %286 = vector.broadcast %c16_i32_143 : i32 to vector<1x256xi32>
    %287 = arith.cmpi slt, %285, %286 : vector<1x256xi32>
    %288 = arith.andi %283, %287 : vector<1x256xi1>
    %cst_144 = arith.constant 0.000000e+00 : f32
    %289 = vector.broadcast %cst_144 : f32 to vector<8x256xf32>
    %290 = vector.shape_cast %288 : vector<1x256xi1> to vector<1x256xi1>
    %291 = vector.broadcast %290 : vector<1x256xi1> to vector<8x256xi1>
    %292 = arith.select %291, %279, %289 : vector<8x256xi1>, vector<8x256xf32>
    %c192 = arith.constant 192 : index
    %c0_145 = arith.constant 0 : index
    %293 = vector.load %arg12[%c192, %c0_145] : memref<288x256xf32, #tpu.memory_space<vmem>>, vector<8x256xf32>
    tpu.vector_store %arg12[%c192, %c0_145], %292 {strides = array<i32>} : memref<288x256xf32, #tpu.memory_space<vmem>>, vector<8x256xf32>,
    %c0_146 = arith.constant 0 : index
    %c176_147 = arith.constant 176 : index
    %294 = vector.load %arg9[%c0_146, %c176_147] : memref<8x512xf32, #tpu.memory_space<vmem>>, vector<8x256xf32>
    %c200 = arith.constant 200 : index
    %c0_148 = arith.constant 0 : index
    %295 = vector.load %arg12[%c200, %c0_148] : memref<288x256xf32, #tpu.memory_space<vmem>>, vector<8x256xf32>
    tpu.vector_store %arg12[%c200, %c0_148], %294 {strides = array<i32>} : memref<288x256xf32, #tpu.memory_space<vmem>>, vector<8x256xf32>,
    %c0_149 = arith.constant 0 : index
    %c179 = arith.constant 179 : index
    %296 = vector.load %arg9[%c0_149, %c179] : memref<8x512xf32, #tpu.memory_space<vmem>>, vector<8x256xf32>
    %c3_i32_150 = arith.constant 3 : i32
    %297 = vector.broadcast %c3_i32_150 : i32 to vector<1x256xi32>
    %298 = arith.addi %16, %297 : vector<1x256xi32>
    %c0_i32_151 = arith.constant 0 : i32
    %299 = vector.broadcast %c0_i32_151 : i32 to vector<1x256xi32>
    %300 = arith.cmpi sge, %298, %299 : vector<1x256xi32>
    %c3_i32_152 = arith.constant 3 : i32
    %301 = vector.broadcast %c3_i32_152 : i32 to vector<1x256xi32>
    %302 = arith.addi %16, %301 : vector<1x256xi32>
    %c16_i32_153 = arith.constant 16 : i32
    %303 = vector.broadcast %c16_i32_153 : i32 to vector<1x256xi32>
    %304 = arith.cmpi slt, %302, %303 : vector<1x256xi32>
    %305 = arith.andi %300, %304 : vector<1x256xi1>
    %cst_154 = arith.constant 0.000000e+00 : f32
    %306 = vector.broadcast %cst_154 : f32 to vector<8x256xf32>
    %307 = vector.shape_cast %305 : vector<1x256xi1> to vector<1x256xi1>
    %308 = vector.broadcast %307 : vector<1x256xi1> to vector<8x256xi1>
    %309 = arith.select %308, %296, %306 : vector<8x256xi1>, vector<8x256xf32>
    %c208_155 = arith.constant 208 : index
    %c0_156 = arith.constant 0 : index
    %310 = vector.load %arg12[%c208_155, %c0_156] : memref<288x256xf32, #tpu.memory_space<vmem>>, vector<8x256xf32>
    tpu.vector_store %arg12[%c208_155, %c0_156], %309 {strides = array<i32>} : memref<288x256xf32, #tpu.memory_space<vmem>>, vector<8x256xf32>,
    %c0_157 = arith.constant 0 : index
    %c111 = arith.constant 111 : index
    %311 = vector.load %arg9[%c0_157, %c111] : memref<8x512xf32, #tpu.memory_space<vmem>>, vector<8x256xf32>
    %c-1_i32 = arith.constant -1 : i32
    %312 = vector.broadcast %c-1_i32 : i32 to vector<1x256xi32>
    %313 = arith.addi %16, %312 : vector<1x256xi32>
    %c0_i32_158 = arith.constant 0 : i32
    %314 = vector.broadcast %c0_i32_158 : i32 to vector<1x256xi32>
    %315 = arith.cmpi sge, %313, %314 : vector<1x256xi32>
    %c-1_i32_159 = arith.constant -1 : i32
    %316 = vector.broadcast %c-1_i32_159 : i32 to vector<1x256xi32>
    %317 = arith.addi %16, %316 : vector<1x256xi32>
    %c16_i32_160 = arith.constant 16 : i32
    %318 = vector.broadcast %c16_i32_160 : i32 to vector<1x256xi32>
    %319 = arith.cmpi slt, %317, %318 : vector<1x256xi32>
    %320 = arith.andi %315, %319 : vector<1x256xi1>
    %cst_161 = arith.constant 0.000000e+00 : f32
    %321 = vector.broadcast %cst_161 : f32 to vector<8x256xf32>
    %322 = vector.shape_cast %320 : vector<1x256xi1> to vector<1x256xi1>
    %323 = vector.broadcast %322 : vector<1x256xi1> to vector<8x256xi1>
    %324 = arith.select %323, %311, %321 : vector<8x256xi1>, vector<8x256xf32>
    %c216 = arith.constant 216 : index
    %c0_162 = arith.constant 0 : index
    %325 = vector.load %arg12[%c216, %c0_162] : memref<288x256xf32, #tpu.memory_space<vmem>>, vector<8x256xf32>
    tpu.vector_store %arg12[%c216, %c0_162], %324 {strides = array<i32>} : memref<288x256xf32, #tpu.memory_space<vmem>>, vector<8x256xf32>,
    %c0_163 = arith.constant 0 : index
    %c112_164 = arith.constant 112 : index
    %326 = vector.load %arg9[%c0_163, %c112_164] : memref<8x512xf32, #tpu.memory_space<vmem>>, vector<8x256xf32>
    %c224 = arith.constant 224 : index
    %c0_165 = arith.constant 0 : index
    %327 = vector.load %arg12[%c224, %c0_165] : memref<288x256xf32, #tpu.memory_space<vmem>>, vector<8x256xf32>
    tpu.vector_store %arg12[%c224, %c0_165], %326 {strides = array<i32>} : memref<288x256xf32, #tpu.memory_space<vmem>>, vector<8x256xf32>,
    %c0_166 = arith.constant 0 : index
    %c113 = arith.constant 113 : index
    %328 = vector.load %arg9[%c0_166, %c113] : memref<8x512xf32, #tpu.memory_space<vmem>>, vector<8x256xf32>
    %c1_i32_167 = arith.constant 1 : i32
    %329 = vector.broadcast %c1_i32_167 : i32 to vector<1x256xi32>
    %330 = arith.addi %16, %329 : vector<1x256xi32>
    %c0_i32_168 = arith.constant 0 : i32
    %331 = vector.broadcast %c0_i32_168 : i32 to vector<1x256xi32>
    %332 = arith.cmpi sge, %330, %331 : vector<1x256xi32>
    %c1_i32_169 = arith.constant 1 : i32
    %333 = vector.broadcast %c1_i32_169 : i32 to vector<1x256xi32>
    %334 = arith.addi %16, %333 : vector<1x256xi32>
    %c16_i32_170 = arith.constant 16 : i32
    %335 = vector.broadcast %c16_i32_170 : i32 to vector<1x256xi32>
    %336 = arith.cmpi slt, %334, %335 : vector<1x256xi32>
    %337 = arith.andi %332, %336 : vector<1x256xi1>
    %cst_171 = arith.constant 0.000000e+00 : f32
    %338 = vector.broadcast %cst_171 : f32 to vector<8x256xf32>
    %339 = vector.shape_cast %337 : vector<1x256xi1> to vector<1x256xi1>
    %340 = vector.broadcast %339 : vector<1x256xi1> to vector<8x256xi1>
    %341 = arith.select %340, %328, %338 : vector<8x256xi1>, vector<8x256xf32>
    %c232 = arith.constant 232 : index
    %c0_172 = arith.constant 0 : index
    %342 = vector.load %arg12[%c232, %c0_172] : memref<288x256xf32, #tpu.memory_space<vmem>>, vector<8x256xf32>
    tpu.vector_store %arg12[%c232, %c0_172], %341 {strides = array<i32>} : memref<288x256xf32, #tpu.memory_space<vmem>>, vector<8x256xf32>,
    %c0_173 = arith.constant 0 : index
    %c127 = arith.constant 127 : index
    %343 = vector.load %arg9[%c0_173, %c127] : memref<8x512xf32, #tpu.memory_space<vmem>>, vector<8x256xf32>
    %c-1_i32_174 = arith.constant -1 : i32
    %344 = vector.broadcast %c-1_i32_174 : i32 to vector<1x256xi32>
    %345 = arith.addi %16, %344 : vector<1x256xi32>
    %c0_i32_175 = arith.constant 0 : i32
    %346 = vector.broadcast %c0_i32_175 : i32 to vector<1x256xi32>
    %347 = arith.cmpi sge, %345, %346 : vector<1x256xi32>
    %c-1_i32_176 = arith.constant -1 : i32
    %348 = vector.broadcast %c-1_i32_176 : i32 to vector<1x256xi32>
    %349 = arith.addi %16, %348 : vector<1x256xi32>
    %c16_i32_177 = arith.constant 16 : i32
    %350 = vector.broadcast %c16_i32_177 : i32 to vector<1x256xi32>
    %351 = arith.cmpi slt, %349, %350 : vector<1x256xi32>
    %352 = arith.andi %347, %351 : vector<1x256xi1>
    %cst_178 = arith.constant 0.000000e+00 : f32
    %353 = vector.broadcast %cst_178 : f32 to vector<8x256xf32>
    %354 = vector.shape_cast %352 : vector<1x256xi1> to vector<1x256xi1>
    %355 = vector.broadcast %354 : vector<1x256xi1> to vector<8x256xi1>
    %356 = arith.select %355, %343, %353 : vector<8x256xi1>, vector<8x256xf32>
    %c240_179 = arith.constant 240 : index
    %c0_180 = arith.constant 0 : index
    %357 = vector.load %arg12[%c240_179, %c0_180] : memref<288x256xf32, #tpu.memory_space<vmem>>, vector<8x256xf32>
    tpu.vector_store %arg12[%c240_179, %c0_180], %356 {strides = array<i32>} : memref<288x256xf32, #tpu.memory_space<vmem>>, vector<8x256xf32>,
    %c0_181 = arith.constant 0 : index
    %c128_182 = arith.constant 128 : index
    %358 = vector.load %arg9[%c0_181, %c128_182] : memref<8x512xf32, #tpu.memory_space<vmem>>, vector<8x256xf32>
    %c248 = arith.constant 248 : index
    %c0_183 = arith.constant 0 : index
    %359 = vector.load %arg12[%c248, %c0_183] : memref<288x256xf32, #tpu.memory_space<vmem>>, vector<8x256xf32>
    tpu.vector_store %arg12[%c248, %c0_183], %358 {strides = array<i32>} : memref<288x256xf32, #tpu.memory_space<vmem>>, vector<8x256xf32>,
    %c0_184 = arith.constant 0 : index
    %c129 = arith.constant 129 : index
    %360 = vector.load %arg9[%c0_184, %c129] : memref<8x512xf32, #tpu.memory_space<vmem>>, vector<8x256xf32>
    %c1_i32_185 = arith.constant 1 : i32
    %361 = vector.broadcast %c1_i32_185 : i32 to vector<1x256xi32>
    %362 = arith.addi %16, %361 : vector<1x256xi32>
    %c0_i32_186 = arith.constant 0 : i32
    %363 = vector.broadcast %c0_i32_186 : i32 to vector<1x256xi32>
    %364 = arith.cmpi sge, %362, %363 : vector<1x256xi32>
    %c1_i32_187 = arith.constant 1 : i32
    %365 = vector.broadcast %c1_i32_187 : i32 to vector<1x256xi32>
    %366 = arith.addi %16, %365 : vector<1x256xi32>
    %c16_i32_188 = arith.constant 16 : i32
    %367 = vector.broadcast %c16_i32_188 : i32 to vector<1x256xi32>
    %368 = arith.cmpi slt, %366, %367 : vector<1x256xi32>
    %369 = arith.andi %364, %368 : vector<1x256xi1>
    %cst_189 = arith.constant 0.000000e+00 : f32
    %370 = vector.broadcast %cst_189 : f32 to vector<8x256xf32>
    %371 = vector.shape_cast %369 : vector<1x256xi1> to vector<1x256xi1>
    %372 = vector.broadcast %371 : vector<1x256xi1> to vector<8x256xi1>
    %373 = arith.select %372, %360, %370 : vector<8x256xi1>, vector<8x256xf32>
    %c256 = arith.constant 256 : index
    %c0_190 = arith.constant 0 : index
    %374 = vector.load %arg12[%c256, %c0_190] : memref<288x256xf32, #tpu.memory_space<vmem>>, vector<8x256xf32>
    tpu.vector_store %arg12[%c256, %c0_190], %373 {strides = array<i32>} : memref<288x256xf32, #tpu.memory_space<vmem>>, vector<8x256xf32>,
    %c0_191 = arith.constant 0 : index
    %c143 = arith.constant 143 : index
    %375 = vector.load %arg9[%c0_191, %c143] : memref<8x512xf32, #tpu.memory_space<vmem>>, vector<8x256xf32>
    %c-1_i32_192 = arith.constant -1 : i32
    %376 = vector.broadcast %c-1_i32_192 : i32 to vector<1x256xi32>
    %377 = arith.addi %16, %376 : vector<1x256xi32>
    %c0_i32_193 = arith.constant 0 : i32
    %378 = vector.broadcast %c0_i32_193 : i32 to vector<1x256xi32>
    %379 = arith.cmpi sge, %377, %378 : vector<1x256xi32>
    %c-1_i32_194 = arith.constant -1 : i32
    %380 = vector.broadcast %c-1_i32_194 : i32 to vector<1x256xi32>
    %381 = arith.addi %16, %380 : vector<1x256xi32>
    %c16_i32_195 = arith.constant 16 : i32
    %382 = vector.broadcast %c16_i32_195 : i32 to vector<1x256xi32>
    %383 = arith.cmpi slt, %381, %382 : vector<1x256xi32>
    %384 = arith.andi %379, %383 : vector<1x256xi1>
    %cst_196 = arith.constant 0.000000e+00 : f32
    %385 = vector.broadcast %cst_196 : f32 to vector<8x256xf32>
    %386 = vector.shape_cast %384 : vector<1x256xi1> to vector<1x256xi1>
    %387 = vector.broadcast %386 : vector<1x256xi1> to vector<8x256xi1>
    %388 = arith.select %387, %375, %385 : vector<8x256xi1>, vector<8x256xf32>
    %c264 = arith.constant 264 : index
    %c0_197 = arith.constant 0 : index
    %389 = vector.load %arg12[%c264, %c0_197] : memref<288x256xf32, #tpu.memory_space<vmem>>, vector<8x256xf32>
    tpu.vector_store %arg12[%c264, %c0_197], %388 {strides = array<i32>} : memref<288x256xf32, #tpu.memory_space<vmem>>, vector<8x256xf32>,
    %c0_198 = arith.constant 0 : index
    %c144_199 = arith.constant 144 : index
    %390 = vector.load %arg9[%c0_198, %c144_199] : memref<8x512xf32, #tpu.memory_space<vmem>>, vector<8x256xf32>
    %c272 = arith.constant 272 : index
    %c0_200 = arith.constant 0 : index
    %391 = vector.load %arg12[%c272, %c0_200] : memref<288x256xf32, #tpu.memory_space<vmem>>, vector<8x256xf32>
    tpu.vector_store %arg12[%c272, %c0_200], %390 {strides = array<i32>} : memref<288x256xf32, #tpu.memory_space<vmem>>, vector<8x256xf32>,
    %c0_201 = arith.constant 0 : index
    %c145 = arith.constant 145 : index
    %392 = vector.load %arg9[%c0_201, %c145] : memref<8x512xf32, #tpu.memory_space<vmem>>, vector<8x256xf32>
    %c1_i32_202 = arith.constant 1 : i32
    %393 = vector.broadcast %c1_i32_202 : i32 to vector<1x256xi32>
    %394 = arith.addi %16, %393 : vector<1x256xi32>
    %c0_i32_203 = arith.constant 0 : i32
    %395 = vector.broadcast %c0_i32_203 : i32 to vector<1x256xi32>
    %396 = arith.cmpi sge, %394, %395 : vector<1x256xi32>
    %c1_i32_204 = arith.constant 1 : i32
    %397 = vector.broadcast %c1_i32_204 : i32 to vector<1x256xi32>
    %398 = arith.addi %16, %397 : vector<1x256xi32>
    %c16_i32_205 = arith.constant 16 : i32
    %399 = vector.broadcast %c16_i32_205 : i32 to vector<1x256xi32>
    %400 = arith.cmpi slt, %398, %399 : vector<1x256xi32>
    %401 = arith.andi %396, %400 : vector<1x256xi1>
    %cst_206 = arith.constant 0.000000e+00 : f32
    %402 = vector.broadcast %cst_206 : f32 to vector<8x256xf32>
    %403 = vector.shape_cast %401 : vector<1x256xi1> to vector<1x256xi1>
    %404 = vector.broadcast %403 : vector<1x256xi1> to vector<8x256xi1>
    %405 = arith.select %404, %392, %402 : vector<8x256xi1>, vector<8x256xf32>
    %c280 = arith.constant 280 : index
    %c0_207 = arith.constant 0 : index
    %406 = vector.load %arg12[%c280, %c0_207] : memref<288x256xf32, #tpu.memory_space<vmem>>, vector<8x256xf32>
    tpu.vector_store %arg12[%c280, %c0_207], %405 {strides = array<i32>} : memref<288x256xf32, #tpu.memory_space<vmem>>, vector<8x256xf32>,
    %c0_208 = arith.constant 0 : index
    %c0_209 = arith.constant 0 : index
    %407 = vector.load %arg2[%c0_208, %c0_209] : memref<16x288xf32, #tpu.memory_space<vmem>>, vector<16x288xf32>
    %c0_210 = arith.constant 0 : index
    %c0_211 = arith.constant 0 : index
    %408 = vector.load %arg12[%c0_210, %c0_211] : memref<288x256xf32, #tpu.memory_space<vmem>>, vector<288x256xf32>
    %cst_212 = arith.constant dense<0.000000e+00> : vector<16x256xf32>
    %409 = tpu.matmul %407, %408, %cst_212 {dimension_numbers = #tpu.dot_dimension_numbers<[1], [0], [0], [1], [0, 0, 1, 1], [], []>} : vector<16x288xf32>, vector<288x256xf32>, vector<16x256xf32> -> vector<16x256xf32>
    %c0_213 = arith.constant 0 : index
    %c0_214 = arith.constant 0 : index
    %410 = vector.load %arg5[%c0_213, %c0_214] : memref<16x1xf32, #tpu.memory_space<vmem>>, vector<16x1xf32>
    %411 = vector.broadcast %410 : vector<16x1xf32> to vector<16x256xf32>
    %412 = arith.addf %409, %411 : vector<16x256xf32>
    %cst_215 = arith.constant 0.000000e+00 : f32
    %413 = vector.broadcast %cst_215 : f32 to vector<16x256xf32>
    %414 = arith.cmpf ogt, %412, %413 : vector<16x256xf32>
    %cst_216 = arith.constant 2.000000e-01 : f32
    %415 = vector.broadcast %cst_216 : f32 to vector<16x256xf32>
    %416 = arith.mulf %415, %412 : vector<16x256xf32>
    %417 = arith.select %414, %412, %416 : vector<16x256xi1>, vector<16x256xf32>
    %cst_217 = arith.constant 0.000000e+00 : f32
    %418 = vector.broadcast %cst_217 : f32 to vector<16x128xf32>
    %c0_218 = arith.constant 0 : index
    %c0_219 = arith.constant 0 : index
    %419 = vector.load %arg10[%c0_218, %c0_219] : memref<16x512xf32, #tpu.memory_space<vmem>>, vector<16x128xf32>
    tpu.vector_store %arg10[%c0_218, %c0_219], %418 {strides = array<i32>} : memref<16x512xf32, #tpu.memory_space<vmem>>, vector<16x128xf32>,
    %c0_220 = arith.constant 0 : index
    %c384_221 = arith.constant 384 : index
    %420 = vector.load %arg10[%c0_220, %c384_221] : memref<16x512xf32, #tpu.memory_space<vmem>>, vector<16x128xf32>
    tpu.vector_store %arg10[%c0_220, %c384_221], %418 {strides = array<i32>} : memref<16x512xf32, #tpu.memory_space<vmem>>, vector<16x128xf32>,
    %c0_222 = arith.constant 0 : index
    %c128_223 = arith.constant 128 : index
    %421 = vector.load %arg10[%c0_222, %c128_223] : memref<16x512xf32, #tpu.memory_space<vmem>>, vector<16x256xf32>
    tpu.vector_store %arg10[%c0_222, %c128_223], %417 {strides = array<i32>} : memref<16x512xf32, #tpu.memory_space<vmem>>, vector<16x256xf32>,
    %c0_224 = arith.constant 0 : index
    %c111_225 = arith.constant 111 : index
    %422 = vector.load %arg10[%c0_224, %c111_225] : memref<16x512xf32, #tpu.memory_space<vmem>>, vector<16x256xf32>
    %c-1_i32_226 = arith.constant -1 : i32
    %423 = vector.broadcast %c-1_i32_226 : i32 to vector<1x256xi32>
    %424 = arith.addi %16, %423 : vector<1x256xi32>
    %c0_i32_227 = arith.constant 0 : i32
    %425 = vector.broadcast %c0_i32_227 : i32 to vector<1x256xi32>
    %426 = arith.cmpi sge, %424, %425 : vector<1x256xi32>
    %c-1_i32_228 = arith.constant -1 : i32
    %427 = vector.broadcast %c-1_i32_228 : i32 to vector<1x256xi32>
    %428 = arith.addi %16, %427 : vector<1x256xi32>
    %c16_i32_229 = arith.constant 16 : i32
    %429 = vector.broadcast %c16_i32_229 : i32 to vector<1x256xi32>
    %430 = arith.cmpi slt, %428, %429 : vector<1x256xi32>
    %431 = arith.andi %426, %430 : vector<1x256xi1>
    %cst_230 = arith.constant 0.000000e+00 : f32
    %432 = vector.broadcast %cst_230 : f32 to vector<16x256xf32>
    %433 = vector.shape_cast %431 : vector<1x256xi1> to vector<1x256xi1>
    %434 = vector.broadcast %433 : vector<1x256xi1> to vector<16x256xi1>
    %435 = arith.select %434, %422, %432 : vector<16x256xi1>, vector<16x256xf32>
    %c0_231 = arith.constant 0 : index
    %c0_232 = arith.constant 0 : index
    %436 = vector.load %arg13[%c0_231, %c0_232] : memref<144x256xf32, #tpu.memory_space<vmem>>, vector<16x256xf32>
    tpu.vector_store %arg13[%c0_231, %c0_232], %435 {strides = array<i32>} : memref<144x256xf32, #tpu.memory_space<vmem>>, vector<16x256xf32>,
    %c0_233 = arith.constant 0 : index
    %c112_234 = arith.constant 112 : index
    %437 = vector.load %arg10[%c0_233, %c112_234] : memref<16x512xf32, #tpu.memory_space<vmem>>, vector<16x256xf32>
    %c16_235 = arith.constant 16 : index
    %c0_236 = arith.constant 0 : index
    %438 = vector.load %arg13[%c16_235, %c0_236] : memref<144x256xf32, #tpu.memory_space<vmem>>, vector<16x256xf32>
    tpu.vector_store %arg13[%c16_235, %c0_236], %437 {strides = array<i32>} : memref<144x256xf32, #tpu.memory_space<vmem>>, vector<16x256xf32>,
    %c0_237 = arith.constant 0 : index
    %c113_238 = arith.constant 113 : index
    %439 = vector.load %arg10[%c0_237, %c113_238] : memref<16x512xf32, #tpu.memory_space<vmem>>, vector<16x256xf32>
    %c1_i32_239 = arith.constant 1 : i32
    %440 = vector.broadcast %c1_i32_239 : i32 to vector<1x256xi32>
    %441 = arith.addi %16, %440 : vector<1x256xi32>
    %c0_i32_240 = arith.constant 0 : i32
    %442 = vector.broadcast %c0_i32_240 : i32 to vector<1x256xi32>
    %443 = arith.cmpi sge, %441, %442 : vector<1x256xi32>
    %c1_i32_241 = arith.constant 1 : i32
    %444 = vector.broadcast %c1_i32_241 : i32 to vector<1x256xi32>
    %445 = arith.addi %16, %444 : vector<1x256xi32>
    %c16_i32_242 = arith.constant 16 : i32
    %446 = vector.broadcast %c16_i32_242 : i32 to vector<1x256xi32>
    %447 = arith.cmpi slt, %445, %446 : vector<1x256xi32>
    %448 = arith.andi %443, %447 : vector<1x256xi1>
    %cst_243 = arith.constant 0.000000e+00 : f32
    %449 = vector.broadcast %cst_243 : f32 to vector<16x256xf32>
    %450 = vector.shape_cast %448 : vector<1x256xi1> to vector<1x256xi1>
    %451 = vector.broadcast %450 : vector<1x256xi1> to vector<16x256xi1>
    %452 = arith.select %451, %439, %449 : vector<16x256xi1>, vector<16x256xf32>
    %c32_244 = arith.constant 32 : index
    %c0_245 = arith.constant 0 : index
    %453 = vector.load %arg13[%c32_244, %c0_245] : memref<144x256xf32, #tpu.memory_space<vmem>>, vector<16x256xf32>
    tpu.vector_store %arg13[%c32_244, %c0_245], %452 {strides = array<i32>} : memref<144x256xf32, #tpu.memory_space<vmem>>, vector<16x256xf32>,
    %c0_246 = arith.constant 0 : index
    %c127_247 = arith.constant 127 : index
    %454 = vector.load %arg10[%c0_246, %c127_247] : memref<16x512xf32, #tpu.memory_space<vmem>>, vector<16x256xf32>
    %c-1_i32_248 = arith.constant -1 : i32
    %455 = vector.broadcast %c-1_i32_248 : i32 to vector<1x256xi32>
    %456 = arith.addi %16, %455 : vector<1x256xi32>
    %c0_i32_249 = arith.constant 0 : i32
    %457 = vector.broadcast %c0_i32_249 : i32 to vector<1x256xi32>
    %458 = arith.cmpi sge, %456, %457 : vector<1x256xi32>
    %c-1_i32_250 = arith.constant -1 : i32
    %459 = vector.broadcast %c-1_i32_250 : i32 to vector<1x256xi32>
    %460 = arith.addi %16, %459 : vector<1x256xi32>
    %c16_i32_251 = arith.constant 16 : i32
    %461 = vector.broadcast %c16_i32_251 : i32 to vector<1x256xi32>
    %462 = arith.cmpi slt, %460, %461 : vector<1x256xi32>
    %463 = arith.andi %458, %462 : vector<1x256xi1>
    %cst_252 = arith.constant 0.000000e+00 : f32
    %464 = vector.broadcast %cst_252 : f32 to vector<16x256xf32>
    %465 = vector.shape_cast %463 : vector<1x256xi1> to vector<1x256xi1>
    %466 = vector.broadcast %465 : vector<1x256xi1> to vector<16x256xi1>
    %467 = arith.select %466, %454, %464 : vector<16x256xi1>, vector<16x256xf32>
    %c48_253 = arith.constant 48 : index
    %c0_254 = arith.constant 0 : index
    %468 = vector.load %arg13[%c48_253, %c0_254] : memref<144x256xf32, #tpu.memory_space<vmem>>, vector<16x256xf32>
    tpu.vector_store %arg13[%c48_253, %c0_254], %467 {strides = array<i32>} : memref<144x256xf32, #tpu.memory_space<vmem>>, vector<16x256xf32>,
    %c0_255 = arith.constant 0 : index
    %c128_256 = arith.constant 128 : index
    %469 = vector.load %arg10[%c0_255, %c128_256] : memref<16x512xf32, #tpu.memory_space<vmem>>, vector<16x256xf32>
    %c64_257 = arith.constant 64 : index
    %c0_258 = arith.constant 0 : index
    %470 = vector.load %arg13[%c64_257, %c0_258] : memref<144x256xf32, #tpu.memory_space<vmem>>, vector<16x256xf32>
    tpu.vector_store %arg13[%c64_257, %c0_258], %469 {strides = array<i32>} : memref<144x256xf32, #tpu.memory_space<vmem>>, vector<16x256xf32>,
    %c0_259 = arith.constant 0 : index
    %c129_260 = arith.constant 129 : index
    %471 = vector.load %arg10[%c0_259, %c129_260] : memref<16x512xf32, #tpu.memory_space<vmem>>, vector<16x256xf32>
    %c1_i32_261 = arith.constant 1 : i32
    %472 = vector.broadcast %c1_i32_261 : i32 to vector<1x256xi32>
    %473 = arith.addi %16, %472 : vector<1x256xi32>
    %c0_i32_262 = arith.constant 0 : i32
    %474 = vector.broadcast %c0_i32_262 : i32 to vector<1x256xi32>
    %475 = arith.cmpi sge, %473, %474 : vector<1x256xi32>
    %c1_i32_263 = arith.constant 1 : i32
    %476 = vector.broadcast %c1_i32_263 : i32 to vector<1x256xi32>
    %477 = arith.addi %16, %476 : vector<1x256xi32>
    %c16_i32_264 = arith.constant 16 : i32
    %478 = vector.broadcast %c16_i32_264 : i32 to vector<1x256xi32>
    %479 = arith.cmpi slt, %477, %478 : vector<1x256xi32>
    %480 = arith.andi %475, %479 : vector<1x256xi1>
    %cst_265 = arith.constant 0.000000e+00 : f32
    %481 = vector.broadcast %cst_265 : f32 to vector<16x256xf32>
    %482 = vector.shape_cast %480 : vector<1x256xi1> to vector<1x256xi1>
    %483 = vector.broadcast %482 : vector<1x256xi1> to vector<16x256xi1>
    %484 = arith.select %483, %471, %481 : vector<16x256xi1>, vector<16x256xf32>
    %c80_266 = arith.constant 80 : index
    %c0_267 = arith.constant 0 : index
    %485 = vector.load %arg13[%c80_266, %c0_267] : memref<144x256xf32, #tpu.memory_space<vmem>>, vector<16x256xf32>
    tpu.vector_store %arg13[%c80_266, %c0_267], %484 {strides = array<i32>} : memref<144x256xf32, #tpu.memory_space<vmem>>, vector<16x256xf32>,
    %c0_268 = arith.constant 0 : index
    %c143_269 = arith.constant 143 : index
    %486 = vector.load %arg10[%c0_268, %c143_269] : memref<16x512xf32, #tpu.memory_space<vmem>>, vector<16x256xf32>
    %c-1_i32_270 = arith.constant -1 : i32
    %487 = vector.broadcast %c-1_i32_270 : i32 to vector<1x256xi32>
    %488 = arith.addi %16, %487 : vector<1x256xi32>
    %c0_i32_271 = arith.constant 0 : i32
    %489 = vector.broadcast %c0_i32_271 : i32 to vector<1x256xi32>
    %490 = arith.cmpi sge, %488, %489 : vector<1x256xi32>
    %c-1_i32_272 = arith.constant -1 : i32
    %491 = vector.broadcast %c-1_i32_272 : i32 to vector<1x256xi32>
    %492 = arith.addi %16, %491 : vector<1x256xi32>
    %c16_i32_273 = arith.constant 16 : i32
    %493 = vector.broadcast %c16_i32_273 : i32 to vector<1x256xi32>
    %494 = arith.cmpi slt, %492, %493 : vector<1x256xi32>
    %495 = arith.andi %490, %494 : vector<1x256xi1>
    %cst_274 = arith.constant 0.000000e+00 : f32
    %496 = vector.broadcast %cst_274 : f32 to vector<16x256xf32>
    %497 = vector.shape_cast %495 : vector<1x256xi1> to vector<1x256xi1>
    %498 = vector.broadcast %497 : vector<1x256xi1> to vector<16x256xi1>
    %499 = arith.select %498, %486, %496 : vector<16x256xi1>, vector<16x256xf32>
    %c96_275 = arith.constant 96 : index
    %c0_276 = arith.constant 0 : index
    %500 = vector.load %arg13[%c96_275, %c0_276] : memref<144x256xf32, #tpu.memory_space<vmem>>, vector<16x256xf32>
    tpu.vector_store %arg13[%c96_275, %c0_276], %499 {strides = array<i32>} : memref<144x256xf32, #tpu.memory_space<vmem>>, vector<16x256xf32>,
    %c0_277 = arith.constant 0 : index
    %c144_278 = arith.constant 144 : index
    %501 = vector.load %arg10[%c0_277, %c144_278] : memref<16x512xf32, #tpu.memory_space<vmem>>, vector<16x256xf32>
    %c112_279 = arith.constant 112 : index
    %c0_280 = arith.constant 0 : index
    %502 = vector.load %arg13[%c112_279, %c0_280] : memref<144x256xf32, #tpu.memory_space<vmem>>, vector<16x256xf32>
    tpu.vector_store %arg13[%c112_279, %c0_280], %501 {strides = array<i32>} : memref<144x256xf32, #tpu.memory_space<vmem>>, vector<16x256xf32>,
    %c0_281 = arith.constant 0 : index
    %c145_282 = arith.constant 145 : index
    %503 = vector.load %arg10[%c0_281, %c145_282] : memref<16x512xf32, #tpu.memory_space<vmem>>, vector<16x256xf32>
    %c1_i32_283 = arith.constant 1 : i32
    %504 = vector.broadcast %c1_i32_283 : i32 to vector<1x256xi32>
    %505 = arith.addi %16, %504 : vector<1x256xi32>
    %c0_i32_284 = arith.constant 0 : i32
    %506 = vector.broadcast %c0_i32_284 : i32 to vector<1x256xi32>
    %507 = arith.cmpi sge, %505, %506 : vector<1x256xi32>
    %c1_i32_285 = arith.constant 1 : i32
    %508 = vector.broadcast %c1_i32_285 : i32 to vector<1x256xi32>
    %509 = arith.addi %16, %508 : vector<1x256xi32>
    %c16_i32_286 = arith.constant 16 : i32
    %510 = vector.broadcast %c16_i32_286 : i32 to vector<1x256xi32>
    %511 = arith.cmpi slt, %509, %510 : vector<1x256xi32>
    %512 = arith.andi %507, %511 : vector<1x256xi1>
    %cst_287 = arith.constant 0.000000e+00 : f32
    %513 = vector.broadcast %cst_287 : f32 to vector<16x256xf32>
    %514 = vector.shape_cast %512 : vector<1x256xi1> to vector<1x256xi1>
    %515 = vector.broadcast %514 : vector<1x256xi1> to vector<16x256xi1>
    %516 = arith.select %515, %503, %513 : vector<16x256xi1>, vector<16x256xf32>
    %c128_288 = arith.constant 128 : index
    %c0_289 = arith.constant 0 : index
    %517 = vector.load %arg13[%c128_288, %c0_289] : memref<144x256xf32, #tpu.memory_space<vmem>>, vector<16x256xf32>
    tpu.vector_store %arg13[%c128_288, %c0_289], %516 {strides = array<i32>} : memref<144x256xf32, #tpu.memory_space<vmem>>, vector<16x256xf32>,
    %c0_290 = arith.constant 0 : index
    %c0_291 = arith.constant 0 : index
    %518 = vector.load %arg3[%c0_290, %c0_291] : memref<8x144xf32, #tpu.memory_space<vmem>>, vector<8x144xf32>
    %c0_292 = arith.constant 0 : index
    %c0_293 = arith.constant 0 : index
    %519 = vector.load %arg13[%c0_292, %c0_293] : memref<144x256xf32, #tpu.memory_space<vmem>>, vector<144x256xf32>
    %cst_294 = arith.constant dense<0.000000e+00> : vector<8x256xf32>
    %520 = tpu.matmul %518, %519, %cst_294 {dimension_numbers = #tpu.dot_dimension_numbers<[1], [0], [0], [1], [0, 0, 1, 1], [], []>} : vector<8x144xf32>, vector<144x256xf32>, vector<8x256xf32> -> vector<8x256xf32>
    %c0_295 = arith.constant 0 : index
    %c0_296 = arith.constant 0 : index
    %521 = vector.load %arg6[%c0_295, %c0_296] : memref<8x1xf32, #tpu.memory_space<vmem>>, vector<8x1xf32>
    %522 = vector.broadcast %521 : vector<8x1xf32> to vector<8x256xf32>
    %523 = arith.addf %520, %522 : vector<8x256xf32>
    %cst_297 = arith.constant 0.000000e+00 : f32
    %524 = vector.broadcast %cst_297 : f32 to vector<8x256xf32>
    %525 = arith.cmpf ogt, %523, %524 : vector<8x256xf32>
    %cst_298 = arith.constant 2.000000e-01 : f32
    %526 = vector.broadcast %cst_298 : f32 to vector<8x256xf32>
    %527 = arith.mulf %526, %523 : vector<8x256xf32>
    %528 = arith.select %525, %523, %527 : vector<8x256xi1>, vector<8x256xf32>
    %cst_299 = arith.constant 0.000000e+00 : f32
    %529 = vector.broadcast %cst_299 : f32 to vector<8x128xf32>
    %c0_300 = arith.constant 0 : index
    %c0_301 = arith.constant 0 : index
    %530 = vector.load %arg11[%c0_300, %c0_301] : memref<8x512xf32, #tpu.memory_space<vmem>>, vector<8x128xf32>
    tpu.vector_store %arg11[%c0_300, %c0_301], %529 {strides = array<i32>} : memref<8x512xf32, #tpu.memory_space<vmem>>, vector<8x128xf32>,
    %c0_302 = arith.constant 0 : index
    %c384_303 = arith.constant 384 : index
    %531 = vector.load %arg11[%c0_302, %c384_303] : memref<8x512xf32, #tpu.memory_space<vmem>>, vector<8x128xf32>
    tpu.vector_store %arg11[%c0_302, %c384_303], %529 {strides = array<i32>} : memref<8x512xf32, #tpu.memory_space<vmem>>, vector<8x128xf32>,
    %c0_304 = arith.constant 0 : index
    %c128_305 = arith.constant 128 : index
    %532 = vector.load %arg11[%c0_304, %c128_305] : memref<8x512xf32, #tpu.memory_space<vmem>>, vector<8x256xf32>
    tpu.vector_store %arg11[%c0_304, %c128_305], %528 {strides = array<i32>} : memref<8x512xf32, #tpu.memory_space<vmem>>, vector<8x256xf32>,
    %c0_306 = arith.constant 0 : index
    %c111_307 = arith.constant 111 : index
    %533 = vector.load %arg11[%c0_306, %c111_307] : memref<8x512xf32, #tpu.memory_space<vmem>>, vector<8x256xf32>
    %c-1_i32_308 = arith.constant -1 : i32
    %534 = vector.broadcast %c-1_i32_308 : i32 to vector<1x256xi32>
    %535 = arith.addi %16, %534 : vector<1x256xi32>
    %c0_i32_309 = arith.constant 0 : i32
    %536 = vector.broadcast %c0_i32_309 : i32 to vector<1x256xi32>
    %537 = arith.cmpi sge, %535, %536 : vector<1x256xi32>
    %c-1_i32_310 = arith.constant -1 : i32
    %538 = vector.broadcast %c-1_i32_310 : i32 to vector<1x256xi32>
    %539 = arith.addi %16, %538 : vector<1x256xi32>
    %c16_i32_311 = arith.constant 16 : i32
    %540 = vector.broadcast %c16_i32_311 : i32 to vector<1x256xi32>
    %541 = arith.cmpi slt, %539, %540 : vector<1x256xi32>
    %542 = arith.andi %537, %541 : vector<1x256xi1>
    %cst_312 = arith.constant 0.000000e+00 : f32
    %543 = vector.broadcast %cst_312 : f32 to vector<8x256xf32>
    %544 = vector.shape_cast %542 : vector<1x256xi1> to vector<1x256xi1>
    %545 = vector.broadcast %544 : vector<1x256xi1> to vector<8x256xi1>
    %546 = arith.select %545, %533, %543 : vector<8x256xi1>, vector<8x256xf32>
    %c0_313 = arith.constant 0 : index
    %c0_314 = arith.constant 0 : index
    %547 = vector.load %arg14[%c0_313, %c0_314] : memref<72x256xf32, #tpu.memory_space<vmem>>, vector<8x256xf32>
    tpu.vector_store %arg14[%c0_313, %c0_314], %546 {strides = array<i32>} : memref<72x256xf32, #tpu.memory_space<vmem>>, vector<8x256xf32>,
    %c0_315 = arith.constant 0 : index
    %c112_316 = arith.constant 112 : index
    %548 = vector.load %arg11[%c0_315, %c112_316] : memref<8x512xf32, #tpu.memory_space<vmem>>, vector<8x256xf32>
    %c8_317 = arith.constant 8 : index
    %c0_318 = arith.constant 0 : index
    %549 = vector.load %arg14[%c8_317, %c0_318] : memref<72x256xf32, #tpu.memory_space<vmem>>, vector<8x256xf32>
    tpu.vector_store %arg14[%c8_317, %c0_318], %548 {strides = array<i32>} : memref<72x256xf32, #tpu.memory_space<vmem>>, vector<8x256xf32>,
    %c0_319 = arith.constant 0 : index
    %c113_320 = arith.constant 113 : index
    %550 = vector.load %arg11[%c0_319, %c113_320] : memref<8x512xf32, #tpu.memory_space<vmem>>, vector<8x256xf32>
    %c1_i32_321 = arith.constant 1 : i32
    %551 = vector.broadcast %c1_i32_321 : i32 to vector<1x256xi32>
    %552 = arith.addi %16, %551 : vector<1x256xi32>
    %c0_i32_322 = arith.constant 0 : i32
    %553 = vector.broadcast %c0_i32_322 : i32 to vector<1x256xi32>
    %554 = arith.cmpi sge, %552, %553 : vector<1x256xi32>
    %c1_i32_323 = arith.constant 1 : i32
    %555 = vector.broadcast %c1_i32_323 : i32 to vector<1x256xi32>
    %556 = arith.addi %16, %555 : vector<1x256xi32>
    %c16_i32_324 = arith.constant 16 : i32
    %557 = vector.broadcast %c16_i32_324 : i32 to vector<1x256xi32>
    %558 = arith.cmpi slt, %556, %557 : vector<1x256xi32>
    %559 = arith.andi %554, %558 : vector<1x256xi1>
    %cst_325 = arith.constant 0.000000e+00 : f32
    %560 = vector.broadcast %cst_325 : f32 to vector<8x256xf32>
    %561 = vector.shape_cast %559 : vector<1x256xi1> to vector<1x256xi1>
    %562 = vector.broadcast %561 : vector<1x256xi1> to vector<8x256xi1>
    %563 = arith.select %562, %550, %560 : vector<8x256xi1>, vector<8x256xf32>
    %c16_326 = arith.constant 16 : index
    %c0_327 = arith.constant 0 : index
    %564 = vector.load %arg14[%c16_326, %c0_327] : memref<72x256xf32, #tpu.memory_space<vmem>>, vector<8x256xf32>
    tpu.vector_store %arg14[%c16_326, %c0_327], %563 {strides = array<i32>} : memref<72x256xf32, #tpu.memory_space<vmem>>, vector<8x256xf32>,
    %c0_328 = arith.constant 0 : index
    %c127_329 = arith.constant 127 : index
    %565 = vector.load %arg11[%c0_328, %c127_329] : memref<8x512xf32, #tpu.memory_space<vmem>>, vector<8x256xf32>
    %c-1_i32_330 = arith.constant -1 : i32
    %566 = vector.broadcast %c-1_i32_330 : i32 to vector<1x256xi32>
    %567 = arith.addi %16, %566 : vector<1x256xi32>
    %c0_i32_331 = arith.constant 0 : i32
    %568 = vector.broadcast %c0_i32_331 : i32 to vector<1x256xi32>
    %569 = arith.cmpi sge, %567, %568 : vector<1x256xi32>
    %c-1_i32_332 = arith.constant -1 : i32
    %570 = vector.broadcast %c-1_i32_332 : i32 to vector<1x256xi32>
    %571 = arith.addi %16, %570 : vector<1x256xi32>
    %c16_i32_333 = arith.constant 16 : i32
    %572 = vector.broadcast %c16_i32_333 : i32 to vector<1x256xi32>
    %573 = arith.cmpi slt, %571, %572 : vector<1x256xi32>
    %574 = arith.andi %569, %573 : vector<1x256xi1>
    %cst_334 = arith.constant 0.000000e+00 : f32
    %575 = vector.broadcast %cst_334 : f32 to vector<8x256xf32>
    %576 = vector.shape_cast %574 : vector<1x256xi1> to vector<1x256xi1>
    %577 = vector.broadcast %576 : vector<1x256xi1> to vector<8x256xi1>
    %578 = arith.select %577, %565, %575 : vector<8x256xi1>, vector<8x256xf32>
    %c24_335 = arith.constant 24 : index
    %c0_336 = arith.constant 0 : index
    %579 = vector.load %arg14[%c24_335, %c0_336] : memref<72x256xf32, #tpu.memory_space<vmem>>, vector<8x256xf32>
    tpu.vector_store %arg14[%c24_335, %c0_336], %578 {strides = array<i32>} : memref<72x256xf32, #tpu.memory_space<vmem>>, vector<8x256xf32>,
    %c0_337 = arith.constant 0 : index
    %c128_338 = arith.constant 128 : index
    %580 = vector.load %arg11[%c0_337, %c128_338] : memref<8x512xf32, #tpu.memory_space<vmem>>, vector<8x256xf32>
    %c32_339 = arith.constant 32 : index
    %c0_340 = arith.constant 0 : index
    %581 = vector.load %arg14[%c32_339, %c0_340] : memref<72x256xf32, #tpu.memory_space<vmem>>, vector<8x256xf32>
    tpu.vector_store %arg14[%c32_339, %c0_340], %580 {strides = array<i32>} : memref<72x256xf32, #tpu.memory_space<vmem>>, vector<8x256xf32>,
    %c0_341 = arith.constant 0 : index
    %c129_342 = arith.constant 129 : index
    %582 = vector.load %arg11[%c0_341, %c129_342] : memref<8x512xf32, #tpu.memory_space<vmem>>, vector<8x256xf32>
    %c1_i32_343 = arith.constant 1 : i32
    %583 = vector.broadcast %c1_i32_343 : i32 to vector<1x256xi32>
    %584 = arith.addi %16, %583 : vector<1x256xi32>
    %c0_i32_344 = arith.constant 0 : i32
    %585 = vector.broadcast %c0_i32_344 : i32 to vector<1x256xi32>
    %586 = arith.cmpi sge, %584, %585 : vector<1x256xi32>
    %c1_i32_345 = arith.constant 1 : i32
    %587 = vector.broadcast %c1_i32_345 : i32 to vector<1x256xi32>
    %588 = arith.addi %16, %587 : vector<1x256xi32>
    %c16_i32_346 = arith.constant 16 : i32
    %589 = vector.broadcast %c16_i32_346 : i32 to vector<1x256xi32>
    %590 = arith.cmpi slt, %588, %589 : vector<1x256xi32>
    %591 = arith.andi %586, %590 : vector<1x256xi1>
    %cst_347 = arith.constant 0.000000e+00 : f32
    %592 = vector.broadcast %cst_347 : f32 to vector<8x256xf32>
    %593 = vector.shape_cast %591 : vector<1x256xi1> to vector<1x256xi1>
    %594 = vector.broadcast %593 : vector<1x256xi1> to vector<8x256xi1>
    %595 = arith.select %594, %582, %592 : vector<8x256xi1>, vector<8x256xf32>
    %c40_348 = arith.constant 40 : index
    %c0_349 = arith.constant 0 : index
    %596 = vector.load %arg14[%c40_348, %c0_349] : memref<72x256xf32, #tpu.memory_space<vmem>>, vector<8x256xf32>
    tpu.vector_store %arg14[%c40_348, %c0_349], %595 {strides = array<i32>} : memref<72x256xf32, #tpu.memory_space<vmem>>, vector<8x256xf32>,
    %c0_350 = arith.constant 0 : index
    %c143_351 = arith.constant 143 : index
    %597 = vector.load %arg11[%c0_350, %c143_351] : memref<8x512xf32, #tpu.memory_space<vmem>>, vector<8x256xf32>
    %c-1_i32_352 = arith.constant -1 : i32
    %598 = vector.broadcast %c-1_i32_352 : i32 to vector<1x256xi32>
    %599 = arith.addi %16, %598 : vector<1x256xi32>
    %c0_i32_353 = arith.constant 0 : i32
    %600 = vector.broadcast %c0_i32_353 : i32 to vector<1x256xi32>
    %601 = arith.cmpi sge, %599, %600 : vector<1x256xi32>
    %c-1_i32_354 = arith.constant -1 : i32
    %602 = vector.broadcast %c-1_i32_354 : i32 to vector<1x256xi32>
    %603 = arith.addi %16, %602 : vector<1x256xi32>
    %c16_i32_355 = arith.constant 16 : i32
    %604 = vector.broadcast %c16_i32_355 : i32 to vector<1x256xi32>
    %605 = arith.cmpi slt, %603, %604 : vector<1x256xi32>
    %606 = arith.andi %601, %605 : vector<1x256xi1>
    %cst_356 = arith.constant 0.000000e+00 : f32
    %607 = vector.broadcast %cst_356 : f32 to vector<8x256xf32>
    %608 = vector.shape_cast %606 : vector<1x256xi1> to vector<1x256xi1>
    %609 = vector.broadcast %608 : vector<1x256xi1> to vector<8x256xi1>
    %610 = arith.select %609, %597, %607 : vector<8x256xi1>, vector<8x256xf32>
    %c48_357 = arith.constant 48 : index
    %c0_358 = arith.constant 0 : index
    %611 = vector.load %arg14[%c48_357, %c0_358] : memref<72x256xf32, #tpu.memory_space<vmem>>, vector<8x256xf32>
    tpu.vector_store %arg14[%c48_357, %c0_358], %610 {strides = array<i32>} : memref<72x256xf32, #tpu.memory_space<vmem>>, vector<8x256xf32>,
    %c0_359 = arith.constant 0 : index
    %c144_360 = arith.constant 144 : index
    %612 = vector.load %arg11[%c0_359, %c144_360] : memref<8x512xf32, #tpu.memory_space<vmem>>, vector<8x256xf32>
    %c56_361 = arith.constant 56 : index
    %c0_362 = arith.constant 0 : index
    %613 = vector.load %arg14[%c56_361, %c0_362] : memref<72x256xf32, #tpu.memory_space<vmem>>, vector<8x256xf32>
    tpu.vector_store %arg14[%c56_361, %c0_362], %612 {strides = array<i32>} : memref<72x256xf32, #tpu.memory_space<vmem>>, vector<8x256xf32>,
    %c0_363 = arith.constant 0 : index
    %c145_364 = arith.constant 145 : index
    %614 = vector.load %arg11[%c0_363, %c145_364] : memref<8x512xf32, #tpu.memory_space<vmem>>, vector<8x256xf32>
    %c1_i32_365 = arith.constant 1 : i32
    %615 = vector.broadcast %c1_i32_365 : i32 to vector<1x256xi32>
    %616 = arith.addi %16, %615 : vector<1x256xi32>
    %c0_i32_366 = arith.constant 0 : i32
    %617 = vector.broadcast %c0_i32_366 : i32 to vector<1x256xi32>
    %618 = arith.cmpi sge, %616, %617 : vector<1x256xi32>
    %c1_i32_367 = arith.constant 1 : i32
    %619 = vector.broadcast %c1_i32_367 : i32 to vector<1x256xi32>
    %620 = arith.addi %16, %619 : vector<1x256xi32>
    %c16_i32_368 = arith.constant 16 : i32
    %621 = vector.broadcast %c16_i32_368 : i32 to vector<1x256xi32>
    %622 = arith.cmpi slt, %620, %621 : vector<1x256xi32>
    %623 = arith.andi %618, %622 : vector<1x256xi1>
    %cst_369 = arith.constant 0.000000e+00 : f32
    %624 = vector.broadcast %cst_369 : f32 to vector<8x256xf32>
    %625 = vector.shape_cast %623 : vector<1x256xi1> to vector<1x256xi1>
    %626 = vector.broadcast %625 : vector<1x256xi1> to vector<8x256xi1>
    %627 = arith.select %626, %614, %624 : vector<8x256xi1>, vector<8x256xf32>
    %c64_370 = arith.constant 64 : index
    %c0_371 = arith.constant 0 : index
    %628 = vector.load %arg14[%c64_370, %c0_371] : memref<72x256xf32, #tpu.memory_space<vmem>>, vector<8x256xf32>
    tpu.vector_store %arg14[%c64_370, %c0_371], %627 {strides = array<i32>} : memref<72x256xf32, #tpu.memory_space<vmem>>, vector<8x256xf32>,
    %c0_372 = arith.constant 0 : index
    %c0_373 = arith.constant 0 : index
    %629 = vector.load %arg4[%c0_372, %c0_373] : memref<8x72xf32, #tpu.memory_space<vmem>>, vector<8x72xf32>
    %c0_374 = arith.constant 0 : index
    %c0_375 = arith.constant 0 : index
    %630 = vector.load %arg14[%c0_374, %c0_375] : memref<72x256xf32, #tpu.memory_space<vmem>>, vector<72x256xf32>
    %cst_376 = arith.constant dense<0.000000e+00> : vector<8x256xf32>
    %631 = tpu.matmul %629, %630, %cst_376 {dimension_numbers = #tpu.dot_dimension_numbers<[1], [0], [0], [1], [0, 0, 1, 1], [], []>} : vector<8x72xf32>, vector<72x256xf32>, vector<8x256xf32> -> vector<8x256xf32>
    %c0_377 = arith.constant 0 : index
    %c0_378 = arith.constant 0 : index
    %632 = vector.load %arg7[%c0_377, %c0_378] : memref<8x1xf32, #tpu.memory_space<vmem>>, vector<8x1xf32>
    %633 = vector.broadcast %632 : vector<8x1xf32> to vector<8x256xf32>
    %634 = arith.addf %631, %633 : vector<8x256xf32>
    %c0_379 = arith.constant 0 : index
    %c0_380 = arith.constant 0 : index
    %c0_381 = arith.constant 0 : index
    %635 = vector.load %arg1[%c0_379, %c0_380, %c0_381] : memref<1x8x256xf32, #tpu.memory_space<vmem>>, vector<1x8x256xf32>
    %636 = vector.shape_cast %635 : vector<1x8x256xf32> to vector<8x256xf32>
    %637 = arith.addf %634, %636 : vector<8x256xf32>
    %c0_382 = arith.constant 0 : index
    %c0_383 = arith.constant 0 : index
    %c0_384 = arith.constant 0 : index
    %638 = vector.load %arg8[%c0_382, %c0_383, %c0_384] : memref<1x8x256xf32, #tpu.memory_space<vmem>>, vector<1x8x256xf32>
    %639 = vector.shape_cast %638 : vector<1x8x256xf32> to vector<8x256xf32>
    %640 = vector.shape_cast %637 : vector<8x256xf32> to vector<1x8x256xf32>
    tpu.vector_store %arg8[%c0_382, %c0_383, %c0_384], %640 {strides = array<i32>} : memref<1x8x256xf32, #tpu.memory_space<vmem>>, vector<1x8x256xf32>,
    return
  }
  func.func @transform_0(%arg0: i32) -> (i32, i32, i32) {
    %c0_i32 = arith.constant 0 : i32
    %c0_i32_0 = arith.constant 0 : i32
    %c0_i32_1 = arith.constant 0 : i32
    return %arg0, %c0_i32, %c0_i32_0 : i32, i32, i32
  }
  func.func @transform_1(%arg0: i32) -> (i32, i32) {
    %c0_i32 = arith.constant 0 : i32
    %c0_i32_0 = arith.constant 0 : i32
    %c0_i32_1 = arith.constant 0 : i32
    return %c0_i32, %c0_i32_0 : i32, i32
  }
  func.func @transform_2(%arg0: i32) -> (i32, i32) {
    %c0_i32 = arith.constant 0 : i32
    %c0_i32_0 = arith.constant 0 : i32
    %c0_i32_1 = arith.constant 0 : i32
    return %c0_i32, %c0_i32_0 : i32, i32
  }
  func.func @transform_3(%arg0: i32) -> (i32, i32) {
    %c0_i32 = arith.constant 0 : i32
    %c0_i32_0 = arith.constant 0 : i32
    %c0_i32_1 = arith.constant 0 : i32
    return %c0_i32, %c0_i32_0 : i32, i32
  }
  func.func @transform_4(%arg0: i32) -> (i32, i32) {
    %c0_i32 = arith.constant 0 : i32
    %c0_i32_0 = arith.constant 0 : i32
    %c0_i32_1 = arith.constant 0 : i32
    return %c0_i32, %c0_i32_0 : i32, i32
  }
  func.func @transform_5(%arg0: i32) -> (i32, i32) {
    %c0_i32 = arith.constant 0 : i32
    %c0_i32_0 = arith.constant 0 : i32
    %c0_i32_1 = arith.constant 0 : i32
    return %c0_i32, %c0_i32_0 : i32, i32
  }
  func.func @transform_6(%arg0: i32) -> (i32, i32) {
    %c0_i32 = arith.constant 0 : i32
    %c0_i32_0 = arith.constant 0 : i32
    %c0_i32_1 = arith.constant 0 : i32
    return %c0_i32, %c0_i32_0 : i32, i32
  }
  func.func @transform_7(%arg0: i32) -> (i32, i32, i32) {
    %c0_i32 = arith.constant 0 : i32
    %c0_i32_0 = arith.constant 0 : i32
    %c0_i32_1 = arith.constant 0 : i32
    return %arg0, %c0_i32, %c0_i32_0 : i32, i32, i32
  }
}

</mosaic_0001>

<bundles_post_ra>
// kernel: msdilate_block.1
= control target key start
LH: loop header
LB: loop body
LE: loop exit
PB: predicated region body
PF: predicated region fallthrough
CT: control target
= control target key end

     0   :  { %s2427_s24 = smov 0   ;;  %s3332_s0 = inlined_call_operand.vmem [shape: f32[2,8,256], index: 0, kind: input, shape index: {}]   ;;  %s3333_s1 = inlined_call_operand.vmem [shape: f32[16,288], index: 1, kind: input, shape index: {}]   ;;  %s3334_s2 = inlined_call_operand.vmem [shape: f32[8,144], index: 2, kind: input, shape index: {}]   ;;  %s3335_s3 = inlined_call_operand.vmem [shape: f32[8,72], index: 3, kind: input, shape index: {}]   ;;  %s3336_s4 = inlined_call_operand.vmem [shape: f32[16,1], index: 4, kind: input, shape index: {}]   ;;  %s3337_s5 = inlined_call_operand.vmem [shape: f32[8,1], index: 5, kind: input, shape index: {}]   ;;  %s3338_s6 = inlined_call_operand.vmem [shape: f32[8,1], index: 6, kind: input, shape index: {}]   ;;  %s3339_s7 = inlined_call_operand.vmem [shape: f32[2,8,256], index: 7, kind: output, shape index: {}]  }
   0x1 LB: > { %s2078_s25 = sadd.s32 4294967295, %s2355_s24   ;;  %p2082_p0 = scmp.ge.s32.totalorder %s2355_s24, 1  ;;  %s2355_s24 = sphi %s2427_s24, %s17_s24  }
   0x2   : > { %p237_p1 = scmp.lt.s32.totalorder %s2355_s24, 3 }
   0x4   : > { %p238_p2 = pnand %p2082_p0, %p237_p1 }
   0x5   : > { %p269_p3 = scmp.lt.s32.totalorder (!%p238_p2), %s2078_s25, 1  ;;  %s2358_s26 = smov (!%p238_p2), 5  }
   0x6   : > { %241 = sbr.rel (%p238_p2) target bundleno = 1126 (0x466), region = 48  ;;  %s2359_s8 = smov (!%p238_p2), 123  }
   0x7   : > { %s2360_s9 = smov (!%p238_p2), 53   ;;  %s2361_s10 = smov (!%p238_p2), 75  }
   0x8   : > { %s2362_s11 = smov (!%p238_p2), 1   ;;  %s2363_s12 = smov (!%p238_p2), 80  }
   0x9   : > { %s2364_s13 = smov (!%p238_p2), 85   ;;  %s2365_s14 = smov (!%p238_p2), 15  }
   0xa   : > { %s2366_s15 = smov (!%p238_p2), 9   ;;  %s2367_s16 = smov (!%p238_p2), 16  }
   0xb   : > { %v2357_v0 = vmov 0.0   ;;  %s3433_s25 = smov (!%p269_p3, %s2078_s25), 1  ;;  %s2368_s17 = smov 111   ;;  %v279_v9 = vlaneseq  ;;  %vm647_vm0 = vcmask 433152   ;;  %vm626_vm1 = vcmask 1006592  }
   0xc   : > { %595 = vrot.lane.b32.xlu2 %v2357_v0, %s2358_s26  ;;  %s2097_s27 = sshll.u32 %s3433_s25, 4  ;;  %s2369_s18 = smov 17   ;;  %vm601_vm4 = vcmask 39936   ;;  %vm580_vm5 = vcmask 613376   ;;  %vm549_vm8 = vcmask 654336   ;;  %vm528_vm9 = vcmask 695296  }
   0xd   : > { %s2445_s30 = scalar_lea.vmem %s3332_s0, %s2097_s27  ;;  %s2370_s19 = smov 23   ;;  %v280_v11 = vand.u32 127, %v279_v9  ;;  %vm495_vm10 = vcmask 72704   ;;  %vm3351_vm12 = vcmask 130048   ;;  %vm3344_vm13 = vcmask 908288  }
   0xe   : > { %v2448_v1 = vld [vmem:[%s2445_s30] sm:$0xff]  ;;  %v2456_v2 = vld [vmem:[%s2445_s30 + $0x8] sm:$0xff]  ;;  %s2371_s20 = smov 77   ;;  %s2372_s21 = smov 121   ;;  %vm455_vm14 = vcmask 187392  }
   0xf   : > { %620 = vrot.lane.b32.xlu1 %v2448_v1, %s2359_s8  ;;  %641 = vrot.lane.b32.xlu0 %v2448_v1, %s2360_s9  ;;  %v2467_v3 = vpack.i.bf16 %v2448_v1, %v2357_v0  ;;  %v2236_v4 = vpack.i.bf16 %v2456_v2, %v2456_v2  ;;  %v2494_v5 = vpack.i.bf16 %v2456_v2, %v2448_v1  ;;  %s2373_s22 = smov 112   ;;  %s2374_s23 = smov 113   ;;  %v2548_v12 = vand.u32 15, %v280_v11 }
  0x10   : > { %1196 = vmatpush.msra.mxu1 %v2448_v1  ;;  %s2376_s28 = smov 127   ;;  %s2377_s29 = smov 7   ;;  %v281_v17 = vadd.s32 128, %v280_v11  ;;  %v2266_v61 = vpack.i.bf16 0.0, %v2456_v2 }
  0x11   : > { %v2555_v16 = vadd.s32 4294967291, %v2548_v12  ;;  %v2558_v18 = vadd.s32 5, %v2548_v12  ;;  %v2647_v50 = vadd.s32 7, %v2548_v12 }
  0x12   : > { %v2565_v19 = vand.u32 15, %v281_v17 }
  0x13   : > { %vm509_vm2 = vcmp.ge.s32.totalorder %v2555_v16, 0  ;;  %vm3340_vm3 = vcmp.lt.s32.totalorder %v2558_v18, 16  ;;  %vm371_vm11 = vcmp.lt.s32.totalorder %v2647_v50, 16 }
  0x14   : > { %597 = vrot.lane.b32.xlu2 %v2448_v1, %s2358_s26  ;;  %v2577_v25 = vadd.s32 4294967291, %v2565_v19  ;;  %v2601_v32 = vadd.s32 5, %v2565_v19 }
  0x16   : > { %vm510_vm6 = vcmp.ge.s32.totalorder %v2577_v25, 0  ;;  %vm3341_vm7 = vcmp.lt.s32.totalorder %v2601_v32, 16 }
  0x17   : > { %622 = vrot.lane.b32.xlu1 %v2456_v2, %s2359_s8  ;;  %643 = vrot.lane.b32.xlu0 %v2456_v2, %s2360_s9 }
  0x1c   : > { %576 = vrot.lane.b32.xlu2 %v2448_v1, %s2361_s10 }
  0x1f   : > { %574 = vrot.lane.b32.xlu1 %v2357_v0, %s2361_s10  ;;  %645 = vrot.lane.b32.xlu0 %v2357_v0, %s2360_s9  ;;  %s2379_s9 = smov 105  }
  0x24   : > { %978 = vrot.lane.b32.xlu2 %v2448_v1, %s2362_s11 }
  0x27   : > { %2222 = vrot.lane.b32.xlu1 %v2467_v3, %s2363_s12  ;;  %624 = vrot.lane.b32.xlu0 %v2357_v0, %s2359_s8  ;;  %s2378_s8 = smov 125  }
  0x2c   : > { %524 = vrot.lane.b32.xlu2 %v2448_v1, %s2364_s13 }
  0x2f   : > { %522 = vrot.lane.b32.xlu1 %v2357_v0, %s2364_s13  ;;  %980 = vrot.lane.b32.xlu0 %v2456_v2, %s2362_s11 }
  0x34   : > { %959 = vrot.lane.b32.xlu2 %v2456_v2, %s2365_s14 }
  0x37   : > { %957 = vrot.lane.b32.xlu1 %v2448_v1, %s2365_s14  ;;  %599 = vrot.lane.b32.xlu0 %v2456_v2, %s2358_s26  ;;  %s2375_s26 = smov 83  }
  0x3c   : > { %578 = vrot.lane.b32.xlu2 %v2456_v2, %s2361_s10  ;;  %s2380_s10 = smov 3  }
  0x3f   : > { %491 = vrot.lane.b32.xlu1 %v2456_v2, %s2366_s15  ;;  %489 = vrot.lane.b32.xlu0 %v2448_v1, %s2366_s15 }
  0x44   : > { %2237 = vrot.lane.b32.xlu2 %v2236_v4, %s2363_s12 }
  0x47   : > { %2232 = vrot.lane.b32.xlu1 %v2494_v5, %s2367_s16  ;;  %2227 = vrot.lane.b32.xlu0 %v2494_v5, %s2367_s16 }
  0x4c   : > { %1061 = vrot.lane.b32.xlu2 %v2448_v1, %s2368_s17 }
  0x4f   : > { %908 = vrot.lane.b32.xlu1 %v2456_v2, %s2369_s18  ;;  %906 = vrot.lane.b32.xlu0 %v2448_v1, %s2369_s18 }
  0x54   : > { %451 = vrot.lane.b32.xlu2 %v2456_v2, %s2370_s19 }
  0x57   : > { %449 = vrot.lane.b32.xlu1 %v2448_v1, %s2370_s19  ;;  %1063 = vrot.lane.b32.xlu0 %v2456_v2, %s2368_s17 }
  0x5c   : > { %875 = vrot.lane.b32.xlu2 %v2357_v0, %s2371_s20 }
  0x5f   : > { %873 = vrot.lane.b32.xlu1 %v2456_v2, %s2371_s20  ;;  %526 = vrot.lane.b32.xlu0 %v2456_v2, %s2364_s13  ;;  %s2382_s13 = smov 45  }
  0x64   : > { %430 = vrot.lane.b32.xlu2 %v2456_v2, %s2372_s21 }
  0x66   : > { %v596_v6 = vpop.permute.xlu2 %595 }
  0x67   : > { %428 = vrot.lane.b32.xlu1 %v2448_v1, %s2372_s21  ;;  %2242 = vrot.lane.b32.xlu0 %v2494_v5, %s2373_s22 }
  0x6c   : > { %1022 = vrot.lane.b32.xlu2 %v2448_v1, %s2374_s23 }
  0x6e   : > { %v2526_v7 = vpop.permute.xlu2 %597 }
  0x6f   : > { %2247 = vrot.lane.b32.xlu1 %v2467_v3, %s2363_s12  ;;  %493 = vrot.lane.b32.xlu0 %v2357_v0, %s2366_s15  ;;  %v602_v27 = vsel %vm601_vm4, %v596_v6, %v2526_v7  ;;  %s2381_s12 = smov 119   ;;  %s2383_s15 = smov 51   ;;  %v2697_v6 = vadd.s32 1, %v2548_v12 }
  0x71   : > { %vm3354_vm15 = vcmp.lt.s32.totalorder %v2697_v6, 16 }
  0x74   : > { %834 = vrot.lane.b32.xlu2 %v2456_v2, %s2375_s26 }
  0x76   : > { %v2534_v8 = vpop.permute.xlu2 %576 }
  0x77   : > { %2252 = vrot.lane.b32.xlu1 %v2357_v0, %s2367_s16  ;;  %1024 = vrot.lane.b32.xlu0 %v2456_v2, %s2374_s23 }
  0x7c   : > { %1001 = vrot.lane.b32.xlu2 %v2448_v1, %s2376_s28 }
  0x7e   : > { %v2542_v10 = vpop.permute.xlu2 %978 }
  0x7f   : > { %976 = vrot.lane.b32.xlu1 %v2357_v0, %s2362_s11  ;;  %836 = vrot.lane.b32.xlu0 %v2357_v0, %s2375_s26 }
  0x81   : > { %v621_v13 = vpop.permute.xlu1 %620  ;;  %v642_v14 = vpop.permute.xlu0 %641 }
  0x84   : > { %405 = vrot.lane.b32.xlu2 %v2448_v1, %s2377_s29 }
  0x86   : > { %v2552_v15 = vpop.permute.xlu2 %524 }
  0x87   : > { %403 = vrot.lane.b32.xlu1 %v2357_v0, %s2377_s29  ;;  %1003 = vrot.lane.b32.xlu0 %v2456_v2, %s2376_s28 }
  0x89   : > { %v623_v20 = vpop.permute.xlu1 %622  ;;  %v644_v21 = vpop.permute.xlu0 %643 }
  0x8a   : > { %v648_v22 = vsel %vm647_vm0, %v642_v14, %v644_v21  ;;  %v627_v23 = vsel %vm626_vm1, %v621_v13, %v623_v20 }
  0x8b   : > { %2099 = vmatpush.msk.msra.mxu0 %vm509_vm2, %v648_v22 }
  0x8c   : > { %815 = vrot.lane.b32.xlu2 %v2357_v0, %s2378_s8 }
  0x8d   : > { %2100 = vmatpush.msk.msra.mxu0 %vm3340_vm3, %v627_v23 }
  0x8e   : > { %v2572_v24 = vpop.permute.xlu2 %959 }
  0x8f   : > { %813 = vrot.lane.b32.xlu1 %v2456_v2, %s2378_s8  ;;  %453 = vrot.lane.b32.xlu0 %v2357_v0, %s2370_s19  ;;  %s2384_s19 = smov 48  }
  0x90   : > { %1175 = vmatpush.msra.mxu0 %v2448_v1 }
  0x91   : > { %v575_v26 = vpop.permute.xlu1 %574  ;;  %v646_v28 = vpop.permute.xlu0 %645 }
  0x92   : > { %2101 = vmatpush.msk.msra.mxu0 %vm509_vm2, %v602_v27  ;;  %v649_v29 = vsel %vm647_vm0, %v644_v21, %v646_v28  ;;  %v581_v30 = vsel %vm580_vm5, %v575_v26, %v2534_v8  ;;  %v2751_v28 = vadd.s32 7, %v2565_v19 }
  0x93   : > { %2123 = vmatpush.msk.msra.mxu3 %vm510_vm6, %v649_v29 }
  0x94   : > { %384 = vrot.lane.b32.xlu2 %v2448_v1, %s2379_s9  ;;  %2102 = vmatpush.msk.msra.mxu0 %vm3340_vm3, %v581_v30  ;;  %vm3349_vm3 = vcmask 56320  }
  0x96   : > { %v579_v31 = vpop.permute.xlu2 %578 }
  0x97   : > { %382 = vrot.lane.b32.xlu1 %v2357_v0, %s2379_s9  ;;  %955 = vrot.lane.b32.xlu0 %v2357_v0, %s2365_s14  ;;  %v582_v49 = vsel %vm580_vm5, %v2534_v8, %v579_v31  ;;  %vm3342_vm5 = vcmask 924672  }
  0x99   : > { %v2223_v33 = vpop.permute.xlu1 %2222  ;;  %v625_v34 = vpop.permute.xlu0 %624 }
  0x9a   : > { %v2225_v35 = vunpack.i.h.bf16 %v2223_v33  ;;  %v2224_v36 = vunpack.i.l.bf16 %v2223_v33  ;;  %v628_v37 = vsel %vm626_vm1, %v623_v20, %v625_v34  ;;  %vm434_vm1 = vcmask 990208  }
  0x9b   : > { %2124 = vmatpush.msk.msra.mxu3 %vm3341_vm7, %v628_v37 }
  0x9c   : > { %788 = vrot.lane.b32.xlu2 %v2448_v1, %s2380_s10  ;;  %v550_v39 = vsel %vm549_vm8, %v2224_v36, %v2225_v35  ;;  %v2771_v36 = vadd.s32 4294967295, %v2548_v12 }
  0x9d   : > { %1178 = vmatpush.msra.mxu0 %v550_v39  ;;  %1244 = vmatpush.msra.mxu3 %v2456_v2 }
  0x9e   : > { %v2611_v38 = vpop.permute.xlu2 %2237 }
  0x9f   : > { %2257 = vrot.lane.b32.xlu1 %v2467_v3, %s2373_s22  ;;  %432 = vrot.lane.b32.xlu0 %v2357_v0, %s2372_s21  ;;  %v2239_v47 = vunpack.i.l.bf16 %v2611_v38  ;;  %v2240_v31 = vunpack.i.h.bf16 %v2611_v38 }
  0xa1   : > { %v523_v40 = vpop.permute.xlu1 %522  ;;  %v2623_v41 = vpop.permute.xlu0 %980  ;;  %v551_v51 = vsel %vm549_vm8, %v2225_v35, %v2239_v47 }
  0xa2   : > { %v529_v42 = vsel %vm528_vm9, %v523_v40, %v2552_v15 }
  0xa3   : > { %2103 = vmatpush.msk.msra.mxu0 %vm509_vm2, %v529_v42  ;;  %vm357_vm2 = vcmask 916480  }
  0xa4   : > { %330 = vrot.lane.b32.xlu2 %v2357_v0, %s2381_s12 }
  0xa6   : > { %v1062_v43 = vpop.permute.xlu2 %1061 }
  0xa7   : > { %904 = vrot.lane.b32.xlu1 %v2357_v0, %s2369_s18  ;;  %790 = vrot.lane.b32.xlu0 %v2456_v2, %s2380_s10 }
  0xa9   : > { %v2635_v44 = vpop.permute.xlu1 %957  ;;  %v600_v45 = vpop.permute.xlu0 %599 }
  0xaa   : > { %v603_v46 = vsel %vm601_vm4, %v2526_v7, %v600_v45  ;;  %v2700_v7 = vadd.s32 4294967289, %v2548_v12  ;;  %vm372_vm4 = vcmp.lt.s32.totalorder %v2751_v28, 16  ;;  %v2937_v28 = vld [vmem:[%s3333_s1 + $0x10] sm:$0xff] }
  0xab   : > { %2125 = vmatpush.msk.msra.mxu3 %vm510_vm6, %v603_v46 }
  0xac   : > { %767 = vrot.lane.b32.xlu2 %v2448_v1, %s2382_s13  ;;  %vm3345_vm0 = vcmp.ge.s32.totalorder %v2700_v7, 0 }
  0xad   : > { %2126 = vmatpush.msk.msra.mxu3 %vm3341_vm7, %v582_v49 }
  0xae   : > { %v2640_v48 = vpop.permute.xlu2 %451 }
  0xaf   : > { %407 = vrot.lane.b32.xlu1 %v2456_v2, %s2377_s29  ;;  %332 = vrot.lane.b32.xlu0 %v2448_v1, %s2381_s12 }
  0xb0   : > { %1247 = vmatpush.msra.mxu3 %v551_v51 }
  0xb1   : > { %v2659_v52 = vpop.permute.xlu1 %491  ;;  %v490_v53 = vpop.permute.xlu0 %489 }
  0xb2   : > { %v496_v54 = vsel %vm495_vm10, %v490_v53, %v2659_v52  ;;  %v2807_v53 = vadd.s32 4294967295, %v2565_v19 }
  0xb3   : > { %2104 = vmatpush.msk.msra.mxu0 %vm371_vm11, %v496_v54 }
  0xb4   : > { %386 = vrot.lane.b32.xlu2 %v2456_v2, %s2379_s9  ;;  %vm892_vm7 = vcmp.ge.s32.totalorder %v2807_v53, 0 }
  0xb6   : > { %v2663_v55 = vpop.permute.xlu2 %875 }
  0xb7   : > { %871 = vrot.lane.b32.xlu1 %v2448_v1, %s2371_s20  ;;  %769 = vrot.lane.b32.xlu0 %v2456_v2, %s2382_s13  ;;  %s2385_s20 = smov 43  }
  0xb9   : > { %v2673_v56 = vpop.permute.xlu1 %2232  ;;  %v2675_v57 = vpop.permute.xlu0 %2227 }
  0xba   : > { %v2235_v58 = vunpack.i.h.bf16 %v2673_v56  ;;  %v2234_v59 = vunpack.i.l.bf16 %v2673_v56 }
  0xbc   : > { %716 = vrot.lane.b32.xlu2 %v2448_v1, %s2383_s15  ;;  %v477_v62 = vsel %vm3351_vm12, %v2234_v59, %v2235_v58 }
  0xbd   : > { %1181 = vmatpush.msra.mxu0 %v477_v62 }
  0xbe   : > { %v2679_v60 = vpop.permute.xlu2 %430 }
  0xbf   : > { %2267 = vrot.lane.b32.xlu1 %v2266_v61, %s2373_s22  ;;  %2262 = vrot.lane.b32.xlu0 %v2494_v5, %s2384_s19 }
  0xc1   : > { %v2690_v63 = vpop.permute.xlu1 %908  ;;  %v2692_v3 = vpop.permute.xlu0 %906 }
  0xc4   : > { %334 = vrot.lane.b32.xlu2 %v2456_v2, %s2381_s12 }
  0xc6   : > { %v2694_v4 = vpop.permute.xlu2 %1022 }
  0xc7   : > { %832 = vrot.lane.b32.xlu1 %v2448_v1, %s2375_s26  ;;  %718 = vrot.lane.b32.xlu0 %v2456_v2, %s2383_s15 }
  0xc9   : > { %v450_v5 = vpop.permute.xlu1 %449  ;;  %v2710_v8 = vpop.permute.xlu0 %1063 }
  0xca   : > { %v1068_v9 = vsel %vm3344_vm13, %v1062_v43, %v2710_v8  ;;  %v456_v11 = vsel %vm455_vm14, %v450_v5, %v2640_v48  ;;  %v2230_v5 = vunpack.i.h.bf16 %v2675_v57 }
  0xcb   : > { %2120 = vmatpush.msk.msra.mxu2 %vm3354_vm15, %v1068_v9  ;;  %2105 = vmatpush.msk.msra.mxu0 %vm3345_vm0, %v456_v11  ;;  %v2229_v9 = vunpack.i.l.bf16 %v2675_v57 }
  0xcc   : > { %811 = vrot.lane.b32.xlu2 %v2448_v1, %s2378_s8 }
  0xce   : > { %v2716_v13 = vpop.permute.xlu2 %834 }
  0xcf   : > { %685 = vrot.lane.b32.xlu1 %v2357_v0, %s2385_s20  ;;  %683 = vrot.lane.b32.xlu0 %v2456_v2, %s2385_s20 }
  0xd1   : > { %v2726_v14 = vpop.permute.xlu1 %873  ;;  %v527_v16 = vpop.permute.xlu0 %526 }
  0xd2   : > { %v530_v17 = vsel %vm528_vm9, %v2552_v15, %v527_v16  ;;  %vm3346_vm9 = vcmask 7168  }
  0xd3   : > { %2127 = vmatpush.msk.msra.mxu3 %vm510_vm6, %v530_v17  ;;  %vm3350_vm6 = vcmp.ge.s32.totalorder %v2771_v36, 0  ;;  %v984_v11 = vsel %vm3346_vm9, %v2542_v10, %v2623_v41  ;;  %v2841_v17 = vadd.s32 3, %v2565_v19  ;;  %v932_v41 = vsel %vm3351_vm12, %v2229_v9, %v2230_v5 }
  0xd4   : > { %1065 = vrot.lane.b32.xlu2 %v2357_v0, %s2368_s17 }
  0xd6   : > { %v1002_v20 = vpop.permute.xlu2 %1001 }
  0xd7   : > { %786 = vrot.lane.b32.xlu1 %v2357_v0, %s2380_s10  ;;  %2272 = vrot.lane.b32.xlu0 %v2266_v61, %s2384_s19 }
  0xd9   : > { %v429_v21 = vpop.permute.xlu1 %428  ;;  %v2737_v22 = vpop.permute.xlu0 %2242 }
  0xda   : > { %v2245_v23 = vunpack.i.h.bf16 %v2737_v22  ;;  %v2244_v15 = vunpack.i.l.bf16 %v2737_v22  ;;  %v435_v25 = vsel %vm434_vm1, %v429_v21, %v2679_v60 }
  0xdb   : > { %2106 = vmatpush.msk.msra.mxu0 %vm371_vm11, %v435_v25  ;;  %v2861_v25 = vadd.s32 4294967293, %v2565_v19 }
  0xdc   : > { %1026 = vrot.lane.b32.xlu2 %v2357_v0, %s2374_s23  ;;  %v1049_v27 = vsel %vm357_vm2, %v2244_v15, %v2245_v23 }
  0xdd   : > { %1232 = vmatpush.msra.mxu2 %v1049_v27  ;;  %1184 = vmatpush.msra.mxu0 %v2448_v1 }
  0xde   : > { %v2743_v26 = vpop.permute.xlu2 %405 }
  0xdf   : > { %735 = vrot.lane.b32.xlu1 %v2357_v0, %s2384_s19  ;;  %765 = vrot.lane.b32.xlu0 %v2357_v0, %s2382_s13 }
  0xe1   : > { %v2759_v29 = vpop.permute.xlu1 %2247  ;;  %v494_v30 = vpop.permute.xlu0 %493 }
  0xe2   : > { %v2250_v33 = vunpack.i.h.bf16 %v2759_v29  ;;  %v497_v34 = vsel %vm495_vm10, %v2659_v52, %v494_v30  ;;  %vm3343_vm10 = vcmask 1039360  }
  0xe3   : > { %2128 = vmatpush.msk.msra.mxu3 %vm372_vm4, %v497_v34 }
  0xe4   : > { %681 = vrot.lane.b32.xlu2 %v2448_v1, %s2385_s20  ;;  %v2776_v37 = vsel %vm549_vm8, %v2250_v33, %v2240_v31 }
  0xe6   : > { %v2766_v35 = vpop.permute.xlu2 %815 }
  0xe7   : > { %1005 = vrot.lane.b32.xlu1 %v2357_v0, %s2376_s28  ;;  %714 = vrot.lane.b32.xlu0 %v2357_v0, %s2383_s15 }
  0xe9   : > { %v2783_v39 = vpop.permute.xlu1 %2252  ;;  %v2785_v40 = vpop.permute.xlu0 %1024 }
  0xea   : > { %v2254_v42 = vunpack.i.l.bf16 %v2783_v39  ;;  %v1029_v43 = vsel %vm3342_vm5, %v2694_v4, %v2785_v40  ;;  %vm3353_vm5 = vcmask 121856   ;;  %v2827_v4 = vadd.s32 4294967289, %v2565_v19 }
  0xeb   : > { %2121 = vmatpush.msk.msra.mxu2 %vm3350_vm6, %v1029_v43  ;;  %v963_v16 = vsel %vm3353_vm5, %v2635_v44, %v2572_v24  ;;  %v2249_v24 = vunpack.i.l.bf16 %v2759_v29 }
  0xec   : > { %v478_v46 = vsel %vm3351_vm12, %v2235_v58, %v2254_v42  ;;  %v2812_v58 = vadd.s32 1, %v2565_v19  ;;  %vm3348_vm13 = vcmp.ge.s32.totalorder %v2827_v4, 0  ;;  %v2255_v19 = vunpack.i.h.bf16 %v2783_v39 }
  0xed   : > { %1250 = vmatpush.msra.mxu3 %v478_v46 }
  0xee   : > { %v2791_v45 = vpop.permute.xlu2 %384  ;;  %v931_v34 = vsel %vm3351_vm12, %v2255_v19, %v2229_v9  ;;  %vm3356_vm12 = vcmask 56320  }
  0xef   : > { %662 = vrot.lane.b32.xlu0 %v2448_v1, %s2384_s19 }
  0xf1   : > { %v977_v47 = vpop.permute.xlu1 %976  ;;  %v837_v49 = vpop.permute.xlu0 %836 }
  0xf2   : > { %v983_v51 = vsel %vm3346_vm9, %v977_v47, %v2542_v10  ;;  %vm877_vm9 = vcmask 629760  }
  0xf3   : > { %2110 = vmatpush.msk.msra.mxu1 %vm3350_vm6, %v983_v51  ;;  %vm817_vm6 = vcmask 1022976  }
  0xf6   : > { %v2802_v52 = vpop.permute.xlu2 %788 }
  0xf7   : > { %2279 = vrot.lane.b32.xlu0 %v2357_v0, %s2374_s23 }
  0xf9   : > { %v404_v54 = vpop.permute.xlu1 %403  ;;  %v2809_v56 = vpop.permute.xlu0 %1003 }
  0xfa   : > { %v1008_v59 = vsel %vm3343_vm10, %v1002_v20, %v2809_v56  ;;  %v410_v61 = vsel %vm3349_vm3, %v404_v54, %v2743_v26  ;;  %vm3347_vm10 = vcmp.lt.s32.totalorder %v2812_v58, 16  ;;  %vm388_vm3 = vcmask 859136  }
  0xfb   : > { %2122 = vmatpush.msk.msra.mxu2 %vm3354_vm15, %v1008_v59  ;;  %2107 = vmatpush.msk.msra.mxu0 %vm3345_vm0, %v410_v61  ;;  %vm3352_vm0 = vcmask 138240  }
  0xfc   : > { %v912_v15 = vsel %vm3352_vm0, %v2692_v3, %v2690_v63  ;;  %v860_v63 = vsel %vm549_vm8, %v2240_v31, %v2249_v24  ;;  %vm792_vm8 = vcmask 23552  }
  0xfd   : > { %1265 = vmatpush.msrb.mxu2 %v2456_v2 }
  0xfe   : > { %v2818_v62 = vpop.permute.xlu2 %330 }
  0xff   : > { %2134 = vmatpush.msk.msrb.mxu2 %vm892_vm7, %v984_v11  ;;  %v2921_v11 = vadd.s32 3, %v2548_v12  ;;  %2289 = vrot.lane.b32.xlu0 %v2357_v0, %s2362_s11 }
 0x101   : > { %2135 = vmatpush.msk.msrb.mxu2 %vm3347_vm10, %v963_v16  ;;  %v2846_v57 = vpop.permute.xlu1 %813  ;;  %v454_v10 = vpop.permute.xlu0 %453  ;;  %vm755_vm10 = vcmp.lt.s32.totalorder %v2841_v17, 16 }
 0x102   : > { %v457_v20 = vsel %vm455_vm14, %v2640_v48, %v454_v10  ;;  %v879_v48 = vsel %vm877_vm9, %v2726_v14, %v2663_v55  ;;  %vm838_vm14 = vcmask 678912   ;;  %v819_v33 = vsel %vm817_vm6, %v2846_v57, %v2766_v35 }
 0x103   : > { %1268 = vmatpush.msrb.mxu2 %v932_v41  ;;  %2129 = vmatpush.msk.msra.mxu3 %vm3348_vm13, %v457_v20  ;;  %vm702_vm13 = vcmp.ge.s32.totalorder %v2861_v25, 0  ;;  %v840_v55 = vsel %vm838_vm14, %v2716_v13, %v837_v49 }
 0x105   : > { %2136 = vmatpush.msk.msrb.mxu2 %vm892_vm7, %v912_v15 }
 0x106   : > { %v2852_v21 = vpop.permute.xlu2 %767 }
 0x107   : > { %2137 = vmatpush.msk.msrb.mxu2 %vm755_vm10, %v879_v48 }
 0x109   : > { %1271 = vmatpush.msrb.mxu2 %v860_v63  ;;  %v383_v27 = vpop.permute.xlu1 %382  ;;  %v956_v29 = vpop.permute.xlu0 %955 }
 0x10a   : > { %v962_v38 = vsel %vm3353_vm5, %v956_v29, %v2635_v44  ;;  %v389_v30 = vsel %vm388_vm3, %v383_v27, %v2791_v45  ;;  %vm3358_vm5 = vcmp.ge.s32.totalorder %v2827_v4, 0  ;;  %v699_v29 = vadd.s32 4294967293, %v2548_v12 }
 0x10b   : > { %2138 = vmatpush.msk.msrb.mxu2 %vm702_vm13, %v840_v55  ;;  %2111 = vmatpush.msk.msra.mxu1 %vm3354_vm15, %v962_v38  ;;  %vm754_vm15 = vcmp.lt.s32.totalorder %v2921_v11, 16 }
 0x10c   : > { %2108 = vmatpush.msk.msra.mxu0 %vm371_vm11, %v389_v30  ;;  %vm3355_vm11 = vcmp.ge.s32.totalorder %v2771_v36, 0 }
 0x10d   : > { %2139 = vmatpush.msk.msrb.mxu2 %vm755_vm10, %v819_v33  ;;  %1199 = vmatpush.msra.mxu1 %v931_v34 }
 0x10e   : > { %v387_v31 = vpop.permute.xlu2 %386 }
 0x10f   : > { %1274 = vmatpush.msrb.mxu2 %v2456_v2  ;;  %v390_v9 = vsel %vm388_vm3, %v2791_v45, %v387_v31  ;;  %vm1166_vm3 = vcmask 261120  }
 0x110   : > { %2087 = vmatmul.msk.f32.vlgmr.msra.gmra.mxu2 %vm1166_vm3, %v2937_v28 }
 0x111   : > { %v2258_v44 = vpop.permute.xlu1 %2257  ;;  %v433_v39 = vpop.permute.xlu0 %432 }
 0x112   : > { %v2260_v42 = vunpack.i.h.bf16 %v2258_v44  ;;  %v2259_v43 = vunpack.i.l.bf16 %v2258_v44  ;;  %v436_v46 = vsel %vm434_vm1, %v2679_v60, %v433_v39  ;;  %vm336_vm1 = vcmask 973824  }
 0x113   : > { %2130 = vmatpush.msk.msra.mxu3 %vm372_vm4, %v436_v46  ;;  %v1154_v46 = vld [vmem:[%s3336_s4] sm:$0xff] }
 0x114   : > { %v358_v50 = vsel %vm357_vm2, %v2259_v43, %v2260_v42  ;;  %v2386_v43 = vmov 0  }
 0x115   : > { %1187 = vmatpush.msra.mxu0 %v358_v50  ;;  %1253 = vmatpush.msra.mxu3 %v2456_v2 }
 0x116   : > { %v2896_v47 = vpop.permute.xlu2 %716  ;;  %2276 = vset.pattern.permute.xlu1 %v2386_v43  ;;  %2277 = vset.pattern.permute.xlu2 %v2386_v43 }
 0x117   : > { %2338 = vset.pattern.permute.xlu0 %v2386_v43  ;;  %1158 = vperm.xlu2 %2277, %v1154_v46  }
 0x119   : > { %v905_v35 = vpop.permute.xlu1 %904  ;;  %v791_v49 = vpop.permute.xlu0 %790 }
 0x11a   : > { %v911_v51 = vsel %vm3352_vm0, %v905_v35, %v2692_v3  ;;  %v794_v54 = vsel %vm792_vm8, %v2802_v52, %v791_v49  ;;  %vm3357_vm0 = vcmp.ge.s32.totalorder %v2700_v7, 0  ;;  %v1080_v49 = vld [vmem:[%s3333_s1 + $0x20] sm:$0xff] }
 0x11b   : > { %2112 = vmatpush.msk.msra.mxu1 %vm3355_vm11, %v911_v51  ;;  %2140 = vmatpush.msk.msrb.mxu2 %vm702_vm13, %v794_v54  ;;  %vm771_vm11 = vcmask 367616  }
 0x11e   : > { %v335_v60 = vpop.permute.xlu2 %334 }
 0x121   : > { %v408_v59 = vpop.permute.xlu1 %407  ;;  %v333_v61 = vpop.permute.xlu0 %332 }
 0x122   : > { %v337_v2 = vsel %vm336_vm1, %v2818_v62, %v333_v61  ;;  %v411_v5 = vsel %vm3356_vm12, %v2743_v26, %v408_v59  ;;  %vm3359_vm12 = vcmask 908288   ;;  %v338_v55 = vsel %vm336_vm1, %v333_v61, %v335_v60 }
 0x123   : > { %2109 = vmatpush.msk.msra.mxu0 %vm3357_vm0, %v337_v2  ;;  %2131 = vmatpush.msk.msra.mxu3 %vm3358_vm5, %v411_v5  ;;  %vm3360_vm0 = vcmp.lt.s32.totalorder %v2812_v58, 16 }
 0x125   : > { %2132 = vmatpush.msk.msra.mxu3 %vm372_vm4, %v390_v9  ;;  %vm668_vm4 = vcmask 392192  }
 0x126   : > { %v812_v3 = vpop.permute.xlu2 %811 }
 0x127   : > { %v818_v4 = vsel %vm817_vm6, %v812_v3, %v2846_v57  ;;  %vm3363_vm6 = vcmask 1039360  }
 0x129   : > { %v872_v26 = vpop.permute.xlu1 %871  ;;  %v770_v62 = vpop.permute.xlu0 %769 }
 0x12a   : > { %v878_v7 = vsel %vm877_vm9, %v872_v26, %v2726_v14  ;;  %v773_v16 = vsel %vm771_vm11, %v2852_v21, %v770_v62  ;;  %vm3361_vm9 = vcmask 924672  }
 0x12b   : > { %2113 = vmatpush.msk.msra.mxu1 %vm754_vm15, %v878_v7  ;;  %2141 = vmatpush.msk.msrb.mxu2 %vm755_vm10, %v773_v16  ;;  %vm720_vm10 = vcmask 416768  }
 0x12d   : > { %1202 = vmatpush.msra.mxu1 %v2776_v37  ;;  %v2956_v37 = vld [vmem:[%s3333_s1 + $0x28] sm:$0xff] }
 0x12e   : > { %v1066_v10 = vpop.permute.xlu2 %1065  ;;  %2088 = vmatmul.msk.f32.gmra.mxu2 %vm1166_vm3, %v2956_v37 }
 0x12f   : > { %v1069_v45 = vsel %vm3359_vm12, %v2710_v8, %v1066_v10  ;;  %v1076_v8 = vld [vmem:[%s3333_s1] sm:$0xff]  ;;  %vm701_vm12 = vcmp.ge.s32.totalorder %v699_v29, 0 }
 0x130   : > { %2144 = vmatpush.msk.msrb.mxu0 %vm3360_vm0, %v1069_v45 }
 0x131   : > { %v2268_v14 = vpop.permute.xlu1 %2267  ;;  %v2946_v17 = vpop.permute.xlu0 %2262  ;;  %1189 = vmatmul.f32.vlgmr.msra.gmra.mxu0 %v1076_v8 }
 0x132   : > { %v2270_v41 = vunpack.i.h.bf16 %v2268_v14  ;;  %v2269_v20 = vunpack.i.l.bf16 %v2268_v14  ;;  %v2265_v24 = vunpack.i.h.bf16 %v2946_v17  ;;  %v2264_v15 = vunpack.i.l.bf16 %v2946_v17 }
 0x134   : > { %v359_v63 = vsel %vm357_vm2, %v2260_v42, %v2269_v20  ;;  %v742_v19 = vsel %vm668_vm4, %v2264_v15, %v2265_v24  ;;  %v1050_v27 = vsel %vm357_vm2, %v2245_v23, %v2270_v41 }
 0x135   : > { %1256 = vmatpush.msra.mxu3 %v359_v63  ;;  %1277 = vmatpush.msrb.mxu2 %v742_v19 }
 0x136   : > { %v1027_v48 = vpop.permute.xlu2 %1026  ;;  %1301 = vmatpush.msrb.mxu0 %v1050_v27 }
 0x137   : > { %2133 = vmatpush.msk.msra.mxu3 %vm3358_vm5, %v338_v55  ;;  %v1030_v38 = vsel %vm3361_vm9, %v2785_v40, %v1027_v48  ;;  %v1079_v40 = vld [vmem:[%s3333_s1 + $0x18] sm:$0xff] }
 0x138   : > { %2145 = vmatpush.msk.msrb.mxu0 %vm892_vm7, %v1030_v38  ;;  %1258 = vmatmul.f32.vlgmr.msra.gmra.mxu3 %v1076_v8 }
 0x139   : > { %v833_v12 = vpop.permute.xlu1 %832  ;;  %v719_v22 = vpop.permute.xlu0 %718  ;;  %1192 = vmatmul.f32.gmra.mxu0 %v1079_v40 }
 0x13a   : > { %v839_v23 = vsel %vm838_vm14, %v833_v12, %v2716_v13  ;;  %v722_v30 = vsel %vm720_vm10, %v2896_v47, %v719_v22  ;;  %vm687_vm14 = vcmask 351232  }
 0x13b   : > { %2114 = vmatpush.msk.msra.mxu1 %vm701_vm12, %v839_v23  ;;  %2142 = vmatpush.msk.msrb.mxu2 %vm702_vm13, %v722_v30  ;;  %vm3362_vm13 = vcmp.lt.s32.totalorder %v2601_v32, 16  ;;  %v1155_v32 = vld [vmem:[%s3336_s4 + $0x8] sm:$0xff] }
 0x13c   : > { %1163 = vperm.xlu1 %2276, %v1155_v32  }
 0x13d   : > { %2115 = vmatpush.msk.msra.mxu1 %vm754_vm15, %v818_v4 }
 0x13e   : > { %v682_v54 = vpop.permute.xlu2 %681 }
 0x13f   : > { %1205 = vmatpush.msra.mxu1 %v2448_v1  ;;  %v1077_v1 = vld [vmem:[%s3333_s1 + $0x8] sm:$0xff] }
 0x140   : > { %1261 = vmatmul.f32.gmra.mxu3 %v1079_v40 }
 0x141   : > { %v686_v13 = vpop.permute.xlu1 %685  ;;  %v684_v31 = vpop.permute.xlu0 %683 }
 0x142   : > { %v689_v25 = vsel %vm687_vm14, %v684_v31, %v686_v13  ;;  %v688_v2 = vsel %vm687_vm14, %v682_v54, %v684_v31 }
 0x143   : > { %2143 = vmatpush.msk.msrb.mxu2 %vm3362_vm13, %v689_v25  ;;  %vm3372_vm13 = vmmov %vm3363_vm6 }
 0x144   : > { %2284 = vrot.lane.b32.xlu1 %v2357_v0, %s2376_s28 }
 0x149   : > { %v787_v33 = vpop.permute.xlu1 %786  ;;  %v2273_v34 = vpop.permute.xlu0 %2272 }
 0x14a   : > { %v2275_v44 = vunpack.i.h.bf16 %v2273_v34  ;;  %v2274_v39 = vunpack.i.l.bf16 %v2273_v34  ;;  %v793_v57 = vsel %vm792_vm8, %v787_v33, %v2802_v52  ;;  %vm3365_vm8 = vcmp.lt.s32.totalorder %v2558_v18, 16 }
 0x14b   : > { %2116 = vmatpush.msk.msra.mxu1 %vm701_vm12, %v793_v57 }
 0x14c   : > { %v670_v42 = vsel %vm668_vm4, %v2274_v39, %v2275_v44 }
 0x14d   : > { %1280 = vmatpush.msrb.mxu2 %v670_v42 }
 0x14e   : > { %1281 = vmatmul.f32.vlgmr.msrb.gmra.mxu2 %v1077_v1 }
 0x151   : > { %v736_v52 = vpop.permute.xlu1 %735  ;;  %v766_v50 = vpop.permute.xlu0 %765 }
 0x152   : > { %v772_v35 = vsel %vm771_vm11, %v766_v50, %v2852_v21  ;;  %v741_v51 = vsel %vm668_vm4, %v736_v52, %v2264_v15 }
 0x153   : > { %2117 = vmatpush.msk.msra.mxu1 %vm754_vm15, %v772_v35  ;;  %vm3364_vm15 = vmmov %vm3360_vm0 }
 0x155   : > { %1208 = vmatpush.msra.mxu1 %v741_v51 }
 0x156   : > { %1284 = vmatmul.f32.gmra.mxu2 %v1080_v49 }
 0x159   : > { %v1006_v60 = vpop.permute.xlu1 %1005  ;;  %v715_v59 = vpop.permute.xlu0 %714 }
 0x15a   : > { %v721_v61 = vsel %vm720_vm10, %v715_v59, %v2896_v47  ;;  %v1009_v21 = vsel %vm3363_vm6, %v2809_v56, %v1006_v60 }
 0x15b   : > { %2118 = vmatpush.msk.msra.mxu1 %vm701_vm12, %v721_v61  ;;  %2146 = vmatpush.msk.msrb.mxu0 %vm3364_vm15, %v1009_v21  ;;  %vm3373_vm15 = vcmp.lt.s32.totalorder %v2697_v6, 16 }
 0x15c   : > { %2089 = vmatmul.msk.f32.vlgmr.msrb.gmra.mxu0 %vm1166_vm3, %v2937_v28 }
 0x15d   : > { %2119 = vmatpush.msk.msra.mxu1 %vm3365_vm8, %v688_v2  ;;  %vm3374_vm8 = vcmp.lt.s32.totalorder %v2812_v58, 16 }
 0x161   : > { %v663_v5 = vpop.permute.xlu0 %662 }
 0x162   : > { %v669_v3 = vsel %vm668_vm4, %v663_v5, %v2274_v39  ;;  %vm3366_vm4 = vmmov %vm3361_vm9  ;;  %vm3368_vm9 = vcmp.ge.s32.totalorder %v2771_v36, 0 }
 0x163   : > { %1211 = vmatpush.msra.mxu1 %v669_v3  ;;  %vm3367_vm5 = vmmov %vm3366_vm4 }
 0x164   : > { %1212 = vmatmul.f32.vlgmr.msra.gmra.mxu1 %v1077_v1  ;;  %2090 = vmatmul.msk.f32.gmra.mxu0 %vm1166_vm3, %v2956_v37  ;;  %vm3369_vm10 = vmmov %vm3366_vm4 }
 0x165   : > { %vm3370_vm12 = vmmov %vm3366_vm4 }
 0x166   : > { %vm3371_vm14 = vmmov %vm3368_vm9 }
 0x169   : > { %v2280_v57 = vpop.permute.xlu0 %2279 }
 0x16c   : > { %1215 = vmatmul.f32.gmra.mxu1 %v1080_v49 }
 0x171   : > { %v1159_v9 = vpop.permute.xlu2 %1158  ;;  %v3112_v42 = vpop.permute.xlu0 %2289 }
 0x193   : > { %v1236_v18 = vpop.f32.mrf.mxu2 }
 0x1ae   : > { %v1190_v56 = vpop.f32.mrf.mxu0  ;;  %v1164_v10 = vpop.permute.xlu1 %1163 }
 0x1af   : > { %v1191_v11 = vadd.f32 %v1190_v56, %v1159_v9 }
 0x1b1   : > { %v1239_v47 = vpop.f32.mrf.mxu2 }
 0x1b6   : > { %v1193_v26 = vpop.f32.mrf.mxu0  ;;  %v2285_v32 = vpop.permute.xlu1 %2284 }
 0x1b7   : > { %v1194_v41 = vadd.f32 %v1193_v26, %v1164_v10 }
 0x1bb   : > { %v1259_v7 = vpop.f32.mrf.mxu3 }
 0x1bc   : > { %v1260_v45 = vadd.f32 %v1259_v7, %v1159_v9 }
 0x1c3   : > { %v1262_v48 = vpop.f32.mrf.mxu3 }
 0x1c4   : > { %v1263_v27 = vadd.f32 %v1262_v48, %v1164_v10  ;;  %v2282_v10 = vunpack.i.h.bf16 %v2280_v57 }
 0x1d1   : > { %v1282_v14 = vpop.f32.mrf.mxu2 }
 0x1d2   : > { %v1283_v24 = vadd.f32 %v1282_v14, %v1260_v45 }
 0x1d9   : > { %v1305_v8 = vpop.f32.mrf.mxu0  ;;  %v1285_v55 = vpop.f32.mrf.mxu2 }
 0x1da   : > { %v1306_v19 = vadd.f32 %v1305_v8, %v1283_v24  ;;  %v1286_v23 = vadd.f32 %v1285_v55, %v1263_v27 }
 0x1dc   : > { %v1316_v12 = vmul.f32 0.2, %v1306_v19  ;;  %vm1312_vm3 = vcmp.gt.f32.partialorder %v1306_v19, 0.0 }
 0x1de   : > { %v3050_v40 = vsel %vm1312_vm3, %v1306_v19, %v1316_v12  ;;  %vm3377_vm3 = vmmov %vm3373_vm15  ;;  %v2292_v12 = vunpack.i.h.bf16 %v3112_v42 }
 0x1df   : > { %v2298_v13 = vpack.i.bf16 0.0, %v3050_v40 }
 0x1e1   : > { %v1213_v62 = vpop.f32.mrf.mxu1  ;;  %v1308_v30 = vpop.f32.mrf.mxu0 }
 0x1e2   : > { %v1214_v16 = vadd.f32 %v1213_v62, %v1191_v11  ;;  %v1309_v4 = vadd.f32 %v1308_v30, %v1286_v23  ;;  %v2281_v62 = vunpack.i.l.bf16 %v2280_v57 }
 0x1e4   : > { %v1237_v28 = vadd.f32 %v1236_v18, %v1214_v16  ;;  %v1318_v31 = vmul.f32 0.2, %v1309_v4  ;;  %vm1314_vm0 = vcmp.gt.f32.partialorder %v1309_v4, 0.0 }
 0x1e6   : > { %vm1311_vm1 = vcmp.gt.f32.partialorder %v1237_v28, 0.0  ;;  %v1315_v17 = vmul.f32 0.2, %v1237_v28  ;;  %v3058_v25 = vsel %vm1314_vm0, %v1309_v4, %v1318_v31  ;;  %vm3378_vm0 = vmmov %vm3374_vm8 }
 0x1e7   : > { %v2303_v33 = vpack.i.bf16 0.0, %v3058_v25 }
 0x1e8   : > { %v3033_v20 = vsel %vm1311_vm1, %v1237_v28, %v1315_v17  ;;  %vm3375_vm1 = vmmov %vm3363_vm6 }
 0x1e9   : > { %v1216_v15 = vpop.f32.mrf.mxu1  ;;  %1461 = vrot.lane.b32.xlu0 %v3033_v20, %s2362_s11  ;;  %1507 = vrot.lane.b32.xlu2 %v3033_v20, %s2376_s28  ;;  %v2308_v34 = vpack.i.bf16 %v3050_v40, %v3033_v20 }
 0x1ea   : > { %v1217_v37 = vadd.f32 %v1216_v15, %v1194_v41  ;;  %1547 = vrot.lane.b32.xlu1 %v3033_v20, %s2374_s23  ;;  %v2286_v15 = vunpack.i.l.bf16 %v2285_v32 }
 0x1ec   : > { %v1240_v63 = vadd.f32 %v1239_v47, %v1217_v37  ;;  %v2287_v37 = vunpack.i.h.bf16 %v2285_v32 }
 0x1ee   : > { %vm1313_vm11 = vcmp.gt.f32.partialorder %v1240_v63, 0.0  ;;  %v1317_v29 = vmul.f32 0.2, %v1240_v63 }
 0x1f0   : > { %v3041_v38 = vsel %vm1313_vm11, %v1240_v63, %v1317_v29  ;;  %vm3376_vm11 = vmmov %vm3375_vm1 }
 0x1f1   : > { %1553 = vrot.lane.b32.xlu0 %v3041_v38, %s2374_s23  ;;  %v2293_v22 = vpack.i.bf16 %v3033_v20, %v3041_v38  ;;  %v2323_v44 = vpack.i.bf16 %v3058_v25, %v3041_v38 }
 0x1f2   : > { %1421 = vrot.lane.b32.xlu1 %v3033_v20, %s2365_s14 }
 0x1f3   : > { %2294 = vrot.lane.b32.xlu2 %v2293_v22, %s2373_s22  ;;  %v2291_v22 = vunpack.i.l.bf16 %v3112_v42 }
 0x1f9   : > { %1467 = vrot.lane.b32.xlu0 %v3041_v38, %s2362_s11 }
 0x1fa   : > { %2299 = vrot.lane.b32.xlu1 %v2298_v13, %s2373_s22 }
 0x1fb   : > { %1513 = vrot.lane.b32.xlu2 %v3041_v38, %s2376_s28 }
 0x201   : > { %2304 = vrot.lane.b32.xlu0 %v2303_v33, %s2373_s22  ;;  %v1689_v33 = vld [vmem:[%s3337_s5] sm:$0xff] }
 0x202   : > { %1549 = vrot.lane.b32.xlu1 %v3050_v40, %s2374_s23 }
 0x203   : > { %1427 = vrot.lane.b32.xlu2 %v3041_v38, %s2365_s14 }
 0x209   : > { %2314 = vrot.lane.b32.xlu0 %v2357_v0, %s2365_s14 }
 0x20a   : > { %1463 = vrot.lane.b32.xlu1 %v3050_v40, %s2362_s11 }
 0x20b   : > { %1509 = vrot.lane.b32.xlu2 %v3050_v40, %s2376_s28 }
 0x211   : > { %1515 = vrot.lane.b32.xlu0 %v3058_v25, %s2376_s28 }
 0x212   : > { %1351 = vrot.lane.b32.xlu1 %v3041_v38, %s2369_s18 }
 0x213   : > { %1423 = vrot.lane.b32.xlu2 %v3050_v40, %s2365_s14 }
 0x219   : > { %1345 = vrot.lane.b32.xlu0 %v3033_v20, %s2369_s18 }
 0x21a   : > { %1347 = vrot.lane.b32.xlu1 %v3050_v40, %s2369_s18 }
 0x21b   : > { %1555 = vrot.lane.b32.xlu2 %v3058_v25, %s2374_s23 }
 0x221   : > { %1429 = vrot.lane.b32.xlu0 %v3058_v25, %s2365_s14 }
 0x222   : > { %1469 = vrot.lane.b32.xlu1 %v3058_v25, %s2362_s11 }
 0x223   : > { %2309 = vrot.lane.b32.xlu2 %v2308_v34, %s2367_s16 }
 0x229   : > { %1631 = vrot.lane.b32.xlu0 %v3058_v25, %s2368_s17 }
 0x22a   : > { %2324 = vrot.lane.b32.xlu1 %v2323_v44, %s2367_s16 }
 0x22b   : > { %2319 = vrot.lane.b32.xlu2 %v2357_v0, %s2367_s16 }
 0x231   : > { %2334 = vrot.lane.b32.xlu0 %v2357_v0, %s2369_s18 }
 0x232   : > { %2329 = vrot.lane.b32.xlu1 %v2357_v0, %s2368_s17 }
 0x233   : > { %1353 = vrot.lane.b32.xlu2 %v3058_v25, %s2369_s18 }
 0x239   : > { %1692 = vperm.xlu0 %2338, %v1689_v33  }
 0x23a   : > { %1629 = vrot.lane.b32.xlu1 %v3041_v38, %s2368_s17 }
 0x23b   : > { %1625 = vrot.lane.b32.xlu2 %v3050_v40, %s2368_s17 }
 0x241   : > { %1900 = vrot.lane.b32.xlu0 %v2357_v0, %s2374_s23 }
 0x243   : > { %1623 = vrot.lane.b32.xlu2 %v3033_v20, %s2368_s17  ;;  %v1508_v39 = vpop.permute.xlu2 %1507 }
 0x24b   : > { %1938 = vrot.lane.b32.xlu2 %v2357_v0, %s2368_s17 }
 0x24d   : > { %v2295_v1 = vpop.permute.xlu2 %2294 }
 0x24e   : > { %v2296_v61 = vunpack.i.l.bf16 %v2295_v1  ;;  %v2297_v47 = vunpack.i.h.bf16 %v2295_v1 }
 0x253   : > { %1880 = vrot.lane.b32.xlu2 %v2357_v0, %s2376_s28 }
 0x255   : > { %v1514_v43 = vpop.permute.xlu2 %1513 }
 0x25b   : > { %v3116_v46 = vpop.permute.xlu0 %1461  ;;  %1852 = vrot.lane.b32.xlu2 %v2357_v0, %s2362_s11 }
 0x25c   : > { %v1548_v52 = vpop.permute.xlu1 %1547 }
 0x25d   : > { %v3120_v50 = vpop.permute.xlu2 %1427 }
 0x263   : > { %v1554_v35 = vpop.permute.xlu0 %1553 }
 0x264   : > { %v3122_v49 = vpop.permute.xlu1 %1421 }
 0x265   : > { %v1510_v51 = vpop.permute.xlu2 %1509 }
 0x266   : > { %v1520_v29 = vsel %vm3375_vm1, %v1510_v51, %v2287_v37  ;;  %v1519_v55 = vsel %vm3376_vm11, %v1508_v39, %v1510_v51  ;;  %vm3390_vm11 = vmmov %vm3378_vm0 }
 0x26b   : > { %v3124_v54 = vpop.permute.xlu0 %1467 }
 0x26c   : > { %v2300_v60 = vpop.permute.xlu1 %2299 }
 0x26d   : > { %v3126_v59 = vpop.permute.xlu2 %1423  ;;  %v2302_v2 = vunpack.i.h.bf16 %v2300_v60  ;;  %v2301_v5 = vunpack.i.l.bf16 %v2300_v60 }
 0x26f   : > { %v1599_v7 = vsel %vm357_vm2, %v2297_v47, %v2301_v5  ;;  %v1600_v16 = vsel %vm357_vm2, %v2301_v5, %v2302_v2 }
 0x273   : > { %v2305_v21 = vpop.permute.xlu0 %2304 }
 0x274   : > { %v2307_v3 = vunpack.i.h.bf16 %v2305_v21  ;;  %v2306_v18 = vunpack.i.l.bf16 %v2305_v21  ;;  %v1550_v56 = vpop.permute.xlu1 %1549 }
 0x275   : > { %v1556_v26 = vpop.permute.xlu2 %1555  ;;  %v1560_v17 = vsel %vm3369_vm10, %v1550_v56, %v2282_v10  ;;  %v1559_v24 = vsel %vm3370_vm12, %v1548_v52, %v1550_v56  ;;  %vm3383_vm12 = vcmask 121856  }
 0x276   : > { %v1601_v9 = vsel %vm357_vm2, %v2296_v61, %v2306_v18  ;;  %v1602_v11 = vsel %vm357_vm2, %v2306_v18, %v2307_v3  ;;  %v1562_v28 = vsel %vm3366_vm4, %v1556_v26, %v2281_v62  ;;  %v1561_v45 = vsel %vm3367_vm5, %v1554_v35, %v1556_v26  ;;  %vm3380_vm5 = vmmov %vm3368_vm9 }
 0x277   : > { %1698 = vmatpush.msrb.mxu1 %v1601_v9  ;;  %1738 = vmatpush.msra.mxu2 %v1602_v11  ;;  %vm3379_vm4 = vcmask 7168   ;;  %vm3382_vm10 = vmmov %vm3380_vm5  ;;  %v1651_v9 = vld [vmem:[%s3334_s2] sm:$0xff] }
 0x278   : > { %v1473_v13 = vsel %vm3379_vm4, %v2291_v22, %v3124_v54  ;;  %vm3389_vm1 = vmmov %vm3383_vm12 }
 0x279   : > { %1699 = vmatpush.msrb.mxu1 %v1599_v7  ;;  %1739 = vmatpush.msra.mxu2 %v1600_v16 }
 0x27b   : > { %v2315_v14 = vpop.permute.xlu0 %2314  ;;  %2147 = vmatpush.msk.msrb.mxu1 %vm3368_vm9, %v1561_v45  ;;  %2159 = vmatpush.msk.msra.mxu2 %vm892_vm7, %v1562_v28  ;;  %vm3381_vm9 = vmmov %vm3379_vm4  ;;  %v1652_v28 = vld [vmem:[%s3334_s2 + $0x8] sm:$0xff] }
 0x27c   : > { %v1464_v41 = vpop.permute.xlu1 %1463  ;;  %v2316_v30 = vunpack.i.l.bf16 %v2315_v14 }
 0x27d   : > { %2148 = vmatpush.msk.msrb.mxu1 %vm3371_vm14, %v1559_v24  ;;  %2160 = vmatpush.msk.msra.mxu2 %vm892_vm7, %v1560_v17  ;;  %v2310_v48 = vpop.permute.xlu2 %2309  ;;  %vm3384_vm14 = vmmov %vm3377_vm3 }
 0x27e   : > { %v2312_v52 = vunpack.i.h.bf16 %v2310_v48 }
 0x283   : > { %v1516_v8 = vpop.permute.xlu0 %1515 }
 0x284   : > { %v1522_v63 = vsel %vm3372_vm13, %v1516_v8, %v2286_v15  ;;  %v3145_v19 = vpop.permute.xlu1 %1351  ;;  %v1521_v27 = vsel %vm3363_vm6, %v1514_v43, %v1516_v8  ;;  %vm3385_vm13 = vmmov %vm3383_vm12 }
 0x285   : > { %2149 = vmatpush.msk.msrb.mxu1 %vm3373_vm15, %v1521_v27  ;;  %2161 = vmatpush.msk.msra.mxu2 %vm3374_vm8, %v1522_v63  ;;  %v2320_v31 = vpop.permute.xlu2 %2319  ;;  %vm3386_vm6 = vmmov %vm3377_vm3 }
 0x286   : > { %vm3387_vm15 = vmmov %vm3379_vm4  ;;  %v2322_v51 = vunpack.i.h.bf16 %v2320_v31 }
 0x287   : > { %2150 = vmatpush.msk.msrb.mxu1 %vm3377_vm3, %v1519_v55  ;;  %2162 = vmatpush.msk.msra.mxu2 %vm3378_vm0, %v1520_v29  ;;  %vm3388_vm8 = vmmov %vm3379_vm4  ;;  %vm3392_vm4 = vcmask 130048  }
 0x288   : > { %v1472_v57 = vsel %vm3388_vm8, %v3116_v46, %v1464_v41  ;;  %vm3391_vm3 = vmmov %vm3389_vm1 }
 0x289   : > { %1704 = vmatpush.msrb.mxu1 %v3041_v38  ;;  %1744 = vmatpush.msra.mxu2 %v3058_v25  ;;  %v2317_v38 = vunpack.i.h.bf16 %v2315_v14  ;;  %v1471_v25 = vsel %vm3381_vm9, %v2292_v12, %v3116_v46  ;;  %v1432_v32 = vsel %vm3391_vm3, %v3122_v49, %v3126_v59  ;;  %v2311_v46 = vunpack.i.l.bf16 %v2310_v48  ;;  %vm3394_vm9 = vmmov %vm3392_vm4 }
 0x28a   : > { %vm3401_vm8 = vmmov %vm3378_vm0 }
 0x28b   : > { %v3162_v23 = vpop.permute.xlu0 %1345  ;;  %1705 = vmatpush.msrb.mxu1 %v3033_v20  ;;  %1745 = vmatpush.msra.mxu2 %v3050_v40  ;;  %v1433_v20 = vsel %vm3383_vm12, %v2316_v30, %v3120_v50  ;;  %v1431_v40 = vsel %vm3385_vm13, %v2317_v38, %v3122_v49  ;;  %v1395_v49 = vsel %vm3394_vm9, %v2322_v51, %v2311_v46  ;;  %vm3396_vm12 = vcmask 138240   ;;  %v1967_v38 = vld [vmem:[%s3338_s6] sm:$0xff] }
 0x28c   : > { %v1348_v4 = vpop.permute.xlu1 %1347  ;;  %vm3398_vm13 = vmmov %vm3396_vm12  ;;  %vm3406_vm9 = vcmp.lt.s32.totalorder %v2697_v6, 16 }
 0x28d   : > { %2151 = vmatpush.msk.msrb.mxu1 %vm3380_vm5, %v1473_v13  ;;  %v1354_v1 = vpop.permute.xlu2 %1353  ;;  %vm3393_vm5 = vmmov %vm3392_vm4 }
 0x28e   : > { %v1358_v5 = vsel %vm3396_vm12, %v3145_v19, %v1354_v1 }
 0x28f   : > { %2152 = vmatpush.msk.msrb.mxu1 %vm3382_vm10, %v1471_v25  ;;  %vm3395_vm10 = vmmov %vm3392_vm4 }
 0x290   : > { %v1396_v59 = vsel %vm3395_vm10, %v2311_v46, %v2312_v52 }
 0x291   : > { %2153 = vmatpush.msk.msrb.mxu1 %vm3384_vm14, %v1433_v20  ;;  %vm3397_vm14 = vmmov %vm3396_vm12 }
 0x292   : > { %v1356_v11 = vsel %vm3397_vm14, %v3162_v23, %v1348_v4  ;;  %vm3409_vm14 = vmmov %vm3392_vm4 }
 0x293   : > { %v1430_v34 = vpop.permute.xlu0 %1429  ;;  %2154 = vmatpush.msk.msrb.mxu1 %vm3386_vm6, %v1431_v40  ;;  %vm3399_vm6 = vcmp.ge.s32.totalorder %v2771_v36, 0 }
 0x294   : > { %v1470_v44 = vpop.permute.xlu1 %1469  ;;  %v1434_v42 = vsel %vm3389_vm1, %v3120_v50, %v1430_v34  ;;  %vm3402_vm1 = vmmov %vm3396_vm12 }
 0x295   : > { %v1474_v39 = vsel %vm3387_vm15, %v3124_v54, %v1470_v44  ;;  %v2321_v54 = vunpack.i.l.bf16 %v2320_v31  ;;  %v1626_v2 = vpop.permute.xlu2 %1625  ;;  %vm3400_vm15 = vcmask 908288   ;;  %vm3408_vm12 = vmmov %vm3406_vm9 }
 0x296   : > { %2163 = vmatpush.msk.msra.mxu2 %vm892_vm7, %v1474_v39  ;;  %vm3404_vm3 = vmmov %vm3400_vm15 }
 0x297   : > { %vm3407_vm10 = vmmov %vm3404_vm3 }
 0x298   : > { %2164 = vmatpush.msk.msra.mxu2 %vm892_vm7, %v1472_v57 }
 0x29a   : > { %2165 = vmatpush.msk.msra.mxu2 %vm3390_vm11, %v1434_v42  ;;  %vm3403_vm11 = vmmov %vm3399_vm6 }
 0x29b   : > { %v1632_v43 = vpop.permute.xlu0 %1631 }
 0x29c   : > { %v2325_v35 = vpop.permute.xlu1 %2324  ;;  %2166 = vmatpush.msk.msra.mxu2 %vm3378_vm0, %v1432_v32 }
 0x29d   : > { %v2327_v50 = vunpack.i.h.bf16 %v2325_v35  ;;  %v2326_v60 = vunpack.i.l.bf16 %v2325_v35  ;;  %v1624_v14 = vpop.permute.xlu2 %1623 }
 0x29e   : > { %v1635_v24 = vsel %vm3407_vm10, %v1624_v14, %v1626_v2 }
 0x29f   : > { %v1397_v61 = vsel %vm3392_vm4, %v2321_v54, %v2326_v60  ;;  %v1398_v21 = vsel %vm3393_vm5, %v2326_v60, %v2327_v50  ;;  %vm3405_vm5 = vmmov %vm3404_vm3 }
 0x2a0   : > { %1710 = vmatpush.msrb.mxu1 %v1397_v61  ;;  %1750 = vmatpush.msra.mxu2 %v1398_v21 }
 0x2a2   : > { %1711 = vmatpush.msrb.mxu1 %v1395_v49  ;;  %1751 = vmatpush.msra.mxu2 %v1396_v59 }
 0x2a3   : > { %v2335_v3 = vpop.permute.xlu0 %2334 }
 0x2a4   : > { %v2337_v18 = vunpack.i.h.bf16 %v2335_v3  ;;  %v2336_v56 = vunpack.i.l.bf16 %v2335_v3  ;;  %v2330_v47 = vpop.permute.xlu1 %2329  ;;  %2167 = vmatpush.msk.msra.mxu2 %vm892_vm7, %v1358_v5 }
 0x2a5   : > { %v2332_v26 = vunpack.i.h.bf16 %v2330_v47  ;;  %v2331_v62 = vunpack.i.l.bf16 %v2330_v47  ;;  %v1939_v31 = vpop.permute.xlu2 %1938 }
 0x2a6   : > { %2168 = vmatpush.msk.msra.mxu2 %vm892_vm7, %v1356_v11  ;;  %v1357_v7 = vsel %vm3398_vm13, %v2336_v56, %v3145_v19  ;;  %v1355_v10 = vsel %vm3402_vm1, %v2337_v18, %v3162_v23  ;;  %vm3412_vm1 = vmmov %vm3378_vm0 }
 0x2a7   : > { %2155 = vmatpush.msk.msrb.mxu1 %vm3399_vm6, %v1357_v7  ;;  %v1638_v16 = vsel %vm3400_vm15, %v1632_v43, %v2331_v62  ;;  %1754 = vmatmul.f32.vlgmr.msra.gmra.mxu2 %v1651_v9  ;;  %v1636_v45 = vsel %vm3404_vm3, %v1626_v2, %v2332_v26  ;;  %vm3410_vm15 = vmmov %vm3404_vm3 }
 0x2a8   : > { %2169 = vmatpush.msk.msrb.mxu3 %vm3401_vm8, %v1638_v16  ;;  %vm3411_vm8 = vmmov %vm3404_vm3  ;;  %vm3414_vm3 = vcmask 924672   ;;  %v1948_v16 = vld [vmem:[%s3335_s3] sm:$0xff] }
 0x2a9   : > { %2156 = vmatpush.msk.msrb.mxu1 %vm3403_vm11, %v1355_v10  ;;  %vm3413_vm11 = vmmov %vm3406_vm9 }
 0x2aa   : > { %2170 = vmatpush.msk.msrb.mxu3 %vm3378_vm0, %v1636_v45  ;;  %1714 = vmatmul.f32.vlgmr.msrb.gmra.mxu1 %v1651_v9  ;;  %vm3415_vm0 = vcmask 1039360   ;;  %vm3419_vm10 = vmmov %vm3412_vm1 }
 0x2ab   : > { %2092 = vmatmul.msk.f32.vlgmr.msrb.gmra.mxu3 %vm3392_vm4, %v1652_v28  ;;  %v1693_v8 = vpop.permute.xlu0 %1692  ;;  %vm3416_vm4 = vmmov %vm3412_vm1 }
 0x2ac   : > { %v1630_v17 = vpop.permute.xlu1 %1629 }
 0x2ad   : > { %v1637_v41 = vsel %vm3405_vm5, %v1630_v17, %v1632_v43  ;;  %v1881_v25 = vpop.permute.xlu2 %1880  ;;  %vm3417_vm5 = vcmask 7168  }
 0x2ae   : > { %2157 = vmatpush.msk.msra.mxu1 %vm3406_vm9, %v1637_v41  ;;  %vm3418_vm9 = vcmask 121856  }
 0x2b0   : > { %2158 = vmatpush.msk.msra.mxu1 %vm3408_vm12, %v1635_v24  ;;  %vm3420_vm12 = vmmov %vm3409_vm14  ;;  %v2018_v24 = vld [vmem:[%s2445_s30 + $0x8] sm:$0xff] }
 0x2b2   : > { %2091 = vmatmul.msk.f32.vlgmr.msra.gmra.mxu1 %vm3409_vm14, %v1652_v28  ;;  %vm3421_vm14 = vmmov %vm3414_vm3 }
 0x2b3   : > { %v1901_v33 = vpop.permute.xlu0 %1900 }
 0x2b5   : > { %v1853_v20 = vpop.permute.xlu2 %1852 }
 0x327   : > { %v1715_v15 = vpop.f32.mrf.mxu1 }
 0x328   : > { %v1716_v63 = vadd.f32 %v1715_v15, %v1693_v8 }
 0x32a   : > { %v1755_v37 = vpop.f32.mrf.mxu2 }
 0x32b   : > { %v1756_v48 = vadd.f32 %v1755_v37, %v1693_v8  ;;  %v2017_v37 = vld [vmem:[%s2445_s30] sm:$0xff] }
 0x32e   : > { %v1775_v19 = vpop.f32.mrf.mxu3 }
 0x32f   : > { %v1776_v27 = vadd.f32 %v1775_v19, %v1756_v48  ;;  %v1735_v29 = vpop.f32.mrf.mxu1 }
 0x330   : > { %v1736_v55 = vadd.f32 %v1735_v29, %v1716_v63 }
 0x331   : > { %vm1779_vm13 = vcmp.gt.f32.partialorder %v1776_v27, 0.0  ;;  %v1781_v12 = vmul.f32 0.2, %v1776_v27 }
 0x332   : > { %vm1778_vm6 = vcmp.gt.f32.partialorder %v1736_v55, 0.0  ;;  %v1780_v22 = vmul.f32 0.2, %v1736_v55 }
 0x333   : > { %v1783_v23 = vsel %vm1779_vm13, %v1776_v27, %v1781_v12  ;;  %vm3422_vm13 = vcmp.ge.s32.totalorder %v2771_v36, 0 }
 0x334   : > { %v3244_v30 = vsel %vm1778_vm6, %v1736_v55, %v1780_v22  ;;  %1898 = vrot.lane.b32.xlu2 %v1783_v23, %s2374_s23  ;;  %1936 = vrot.lane.b32.xlu1 %v1783_v23, %s2368_s17  ;;  %v2339_v4 = vpack.i.bf16 0.0, %v1783_v23  ;;  %vm3423_vm6 = vmmov %vm3415_vm0 }
 0x335   : > { %1934 = vrot.lane.b32.xlu0 %v3244_v30, %s2368_s17  ;;  %v2344_v13 = vpack.i.bf16 %v1783_v23, %v3244_v30 }
 0x33c   : > { %2340 = vrot.lane.b32.xlu1 %v2339_v4, %s2373_s22  ;;  %1854 = vrot.lane.b32.xlu2 %v3244_v30, %s2362_s11 }
 0x33d   : > { %1856 = vrot.lane.b32.xlu0 %v1783_v23, %s2362_s11 }
 0x344   : > { %1878 = vrot.lane.b32.xlu1 %v1783_v23, %s2376_s28  ;;  %1834 = vrot.lane.b32.xlu2 %v3244_v30, %s2365_s14 }
 0x345   : > { %1836 = vrot.lane.b32.xlu0 %v1783_v23, %s2365_s14 }
 0x34c   : > { %2345 = vrot.lane.b32.xlu2 %v2344_v13, %s2367_s16  ;;  %1916 = vrot.lane.b32.xlu1 %v3244_v30, %s2373_s22 }
 0x34d   : > { %1796 = vrot.lane.b32.xlu0 %v3244_v30, %s2369_s18 }
 0x354   : > { %1896 = vrot.lane.b32.xlu1 %v3244_v30, %s2374_s23  ;;  %1794 = vrot.lane.b32.xlu2 %v2357_v0, %s2369_s18  ;;  %s278_s23 = scalar_lea.vmem %s3339_s7, %s2097_s27 }
 0x355   : > { %1832 = vrot.lane.b32.xlu0 %v2357_v0, %s2365_s14 }
 0x35c   : > { %1876 = vrot.lane.b32.xlu1 %v3244_v30, %s2376_s28 }
 0x35d   : > { %1970 = vperm.xlu0 %2338, %v1967_v38  }
 0x364   : > { %1798 = vrot.lane.b32.xlu1 %v1783_v23, %s2369_s18 }
 0x36c   : > { %1814 = vrot.lane.b32.xlu1 %v2357_v0, %s2367_s16 }
 0x38e   : > { %v1899_v40 = vpop.permute.xlu2 %1898 }
 0x38f   : > { %v1903_v35 = vsel %vm3414_vm3, %v1899_v40, %v1901_v33  ;;  %vm1973_vm3 = vcmask 588800  }
 0x396   : > { %v1855_v34 = vpop.permute.xlu2 %1854 }
 0x39e   : > { %v1835_v42 = vpop.permute.xlu2 %1834 }
 0x3a6   : > { %v1937_v44 = vpop.permute.xlu1 %1936  ;;  %v2346_v50 = vpop.permute.xlu2 %2345 }
 0x3a7   : > { %v1941_v39 = vsel %vm3410_vm15, %v1937_v44, %v1939_v31  ;;  %v1935_v57 = vpop.permute.xlu0 %1934  ;;  %v2348_v61 = vunpack.i.h.bf16 %v2346_v50  ;;  %v2347_v21 = vunpack.i.l.bf16 %v2346_v50  ;;  %vm3424_vm15 = vmmov %vm3413_vm11 }
 0x3a8   : > { %v1940_v1 = vsel %vm3411_vm8, %v1935_v57, %v1937_v44  ;;  %2177 = vmatpush.msk.msra.mxu3 %vm3412_vm1, %v1941_v39  ;;  %vm3426_vm8 = vmmov %vm3422_vm13 }
 0x3a9   : > { %2171 = vmatpush.msk.msra.mxu0 %vm3413_vm11, %v1940_v1  ;;  %v1821_v3 = vsel %vm3420_vm12, %v2347_v21, %v2348_v61  ;;  %vm3427_vm1 = vmmov %vm3418_vm9 }
 0x3ae   : > { %v2341_v0 = vpop.permute.xlu1 %2340  ;;  %v1795_v28 = vpop.permute.xlu2 %1794 }
 0x3af   : > { %v2343_v32 = vunpack.i.h.bf16 %v2341_v0  ;;  %v2342_v43 = vunpack.i.l.bf16 %v2341_v0  ;;  %v1857_v52 = vpop.permute.xlu0 %1856 }
 0x3b0   : > { %v1859_v49 = vsel %vm3417_vm5, %v1855_v34, %v1857_v52 }
 0x3b1   : > { %v1923_v46 = vsel %vm357_vm2, %v2342_v43, %v2343_v32 }
 0x3b2   : > { %2005 = vmatpush.msra.mxu3 %v1923_v46 }
 0x3b4   : > { %2178 = vmatpush.msk.msra.mxu3 %vm892_vm7, %v1903_v35 }
 0x3b6   : > { %v1879_v51 = vpop.permute.xlu1 %1878 }
 0x3b7   : > { %v1883_v54 = vsel %vm3415_vm0, %v1879_v51, %v1881_v25  ;;  %v1837_v60 = vpop.permute.xlu0 %1836  ;;  %vm3428_vm0 = vcmask 138240  }
 0x3b8   : > { %2179 = vmatpush.msk.msra.mxu3 %vm3416_vm4, %v1883_v54  ;;  %v1839_v59 = vsel %vm3418_vm9, %v1835_v42, %v1837_v60  ;;  %vm3429_vm4 = vmmov %vm3420_vm12 }
 0x3b9   : > { %vm3431_vm9 = vmmov %vm3426_vm8 }
 0x3ba   : > { %2008 = vmatpush.msra.mxu3 %v1783_v23 }
 0x3bc   : > { %2180 = vmatpush.msk.msra.mxu3 %vm892_vm7, %v1859_v49 }
 0x3be   : > { %v1917_v2 = vpop.permute.xlu1 %1916  ;;  %2181 = vmatpush.msk.msra.mxu3 %vm3419_vm10, %v1839_v59 }
 0x3bf   : > { %v1922_v5 = vsel %vm357_vm2, %v1917_v2, %v2342_v43  ;;  %v1797_v47 = vpop.permute.xlu0 %1796  ;;  %vm3425_vm2 = vmmov %vm3417_vm5 }
 0x3c0   : > { %1985 = vmatpush.msra.mxu0 %v1922_v5  ;;  %2011 = vmatpush.msra.mxu3 %v1821_v3  ;;  %v1858_v26 = vsel %vm3425_vm2, %v1853_v20, %v1855_v34  ;;  %vm3430_vm5 = vmmov %vm3428_vm0 }
 0x3c1   : > { %v1800_v6 = vsel %vm3430_vm5, %v1795_v28, %v1797_v47 }
 0x3c6   : > { %v1897_v18 = vpop.permute.xlu1 %1896 }
 0x3c7   : > { %v1902_v56 = vsel %vm3421_vm14, %v1897_v18, %v1899_v40  ;;  %v1833_v58 = vpop.permute.xlu0 %1832 }
 0x3c8   : > { %2172 = vmatpush.msk.msra.mxu0 %vm3422_vm13, %v1902_v56  ;;  %v1838_v62 = vsel %vm3427_vm1, %v1833_v58, %v1835_v42 }
 0x3ce   : > { %v1877_v9 = vpop.permute.xlu1 %1876 }
 0x3cf   : > { %v1882_v11 = vsel %vm3423_vm6, %v1877_v9, %v1879_v51  ;;  %v1971_v17 = vpop.permute.xlu0 %1970 }
 0x3d0   : > { %2173 = vmatpush.msk.msra.mxu0 %vm3424_vm15, %v1882_v11 }
 0x3d2   : > { %1988 = vmatpush.msra.mxu0 %v3244_v30 }
 0x3d4   : > { %2174 = vmatpush.msk.msra.mxu0 %vm3426_vm8, %v1858_v26 }
 0x3d6   : > { %v1799_v7 = vpop.permute.xlu1 %1798  ;;  %2175 = vmatpush.msk.msra.mxu0 %vm3413_vm11, %v1838_v62 }
 0x3d7   : > { %v1801_v10 = vsel %vm3428_vm0, %v1797_v47, %v1799_v7 }
 0x3d8   : > { %2182 = vmatpush.msk.msra.mxu3 %vm892_vm7, %v1801_v10 }
 0x3d9   : > { %2094 = vmatmul.msk.f32.vlgmr.msra.gmra.mxu3 %vm1973_vm3, %v1948_v16 }
 0x3de   : > { %v1815_v45 = vpop.permute.xlu1 %1814 }
 0x3df   : > { %v1820_v14 = vsel %vm3429_vm4, %v1815_v45, %v2347_v21 }
 0x3e0   : > { %1991 = vmatpush.msra.mxu0 %v1820_v14 }
 0x3e2   : > { %2176 = vmatpush.msk.msra.mxu0 %vm3431_vm9, %v1800_v6 }
 0x3e3   : > { %2093 = vmatmul.msk.f32.vlgmr.msra.gmra.mxu0 %vm1973_vm3, %v1948_v16 }
 0x45c   : > { %v2014_v41 = vpop.f32.mrf.mxu3 }
 0x45d   : > { %v2015_v15 = vadd.f32 %v2014_v41, %v1971_v17 }
 0x45f   : > { %v2020_v53 = vadd.f32 %v2018_v24, %v2015_v15 }
 0x460   : > { %v1994_v8 = vpop.f32.mrf.mxu0 }
 0x461   : > { %2022 = vst [vmem:[%s278_s23 + $0x8] sm:$0xff] %v2020_v53  ;;  %v1995_v48 = vadd.f32 %v1994_v8, %v1971_v17 }
 0x463   : > { %v2019_v63 = vadd.f32 %v2017_v37, %v1995_v48 }
 0x465   : > { %2021 = vst [vmem:[%s278_s23] sm:$0xff] %v2019_v63 }
 0x466 PF: > { %s17_s24 = sadd.s32 1, %s2355_s24  }
 0x467   : > { %p14_p4 = scmp.ge.s32.totalorder %s17_s24, 4  }
 0x469   :  { %16 = sbr.rel (!%p14_p4) target bundleno = 1 (0x1), region = 78 }

</bundles_post_ra>
